<compile_context>
chip_gen: v6e
topology: v6e:2x2x1
jax: 0.10.0
libtpu: 0.0.40
codegen_flags: <defaults>
</compile_context>

<pallas_src>
import functools

import jax
import jax.numpy as jnp
from jax.experimental import pallas as pl
from jax.experimental.pallas import tpu as pltpu

EPS = 1e-5
LANE = 128


# --------------------------------------------------------------------------- helpers
def _round_up(n, m):
    return (n + m - 1) // m * m


def _row_tile(n, target=1024):
    """Largest multiple-of-8 divisor of n that is <= target (else n itself)."""
    if n <= target:
        return n
    for t in range(target, 7, -8):
        if n % t == 0:
            return t
    return n  # odd corner case: fall back to a single tile


def _vmem_limit(nbytes):
    """Scoped-VMEM limit derived from the actual per-call footprint (per-generation cap)."""
    try:
        cap = int(pltpu.get_tpu_info().vmem_capacity_bytes)
    except Exception:  # emulator / older runtimes
        cap = 64 * 1024 * 1024
    return int(min(cap - 4 * 1024 * 1024, max(32 * 1024 * 1024, 2 * nbytes)))


def _affine_from_stats(stats, gamma, beta, count):
    """Training-mode BatchNorm folded to a per-channel affine (scale, shift)."""
    s, ss = stats[0], stats[1]
    m = s / count
    var = jnp.maximum(ss / count - m * m, 0.0)  # clamp: cancellation can go slightly <0
    scale = gamma * jax.lax.rsqrt(var + EPS)
    shift = beta - m * scale
    return scale, shift


# --------------------------------------------------------------------------- kernels
def _conv1x1_stats_kernel(x_ref, w_ref, y_ref, stats_ref):
    # One row tile: y = x @ w (MXU, f32 accumulation); per-tile BN partial statistics
    # (sum, sum-of-squares) are fused into the matmul epilogue while y is live in f32.
    y = jnp.dot(x_ref[...], w_ref[...], preferred_element_type=jnp.float32)
    s = jnp.sum(y, axis=0, keepdims=True)
    ss = jnp.sum(y * y, axis=0, keepdims=True)
    stats_ref[...] = jnp.concatenate([s, ss], axis=0)[None]
    y_ref[...] = y.astype(y_ref.dtype)


def _bn_conv3x3_stats_kernel(H, W, y1_ref, sc_ref, sh_ref, w2_ref,
                             y2_ref, stats_ref, pad_ref):
    # One image: bn1 affine, then 3x3 stride-1 pad-1 conv as 9 shift-and-accumulate
    # K=C matmuls over a zero-halo padded scratch; bn2 partial stats from the live
    # f32 accumulator.  Only the halo is zeroed (cheap), every step, so the grid axis
    # can be megacore-"parallel" without relying on scratch persistence.
    C = pad_ref.shape[-1]
    pad_ref[0:1, :, :] = jnp.zeros((1, W + 2, C), pad_ref.dtype)
    pad_ref[H + 1:H + 2, :, :] = jnp.zeros((1, W + 2, C), pad_ref.dtype)
    pad_ref[:, 0:1, :] = jnp.zeros((H + 2, 1, C), pad_ref.dtype)
    pad_ref[:, W + 1:W + 2, :] = jnp.zeros((H + 2, 1, C), pad_ref.dtype)

    y1bn = y1_ref[0].astype(jnp.float32) * sc_ref[...] + sh_ref[...]
    pad_ref[1:H + 1, 1:W + 1, :] = y1bn.astype(pad_ref.dtype)

    acc = jnp.zeros((H * W, C), jnp.float32)
    for t in range(9):                                   # statically unrolled taps
        dh, dw = t // 3, t % 3
        win = pad_ref[dh:dh + H, dw:dw + W, :].reshape(H * W, C)
        acc = acc + jnp.dot(win, w2_ref[dh, dw], preferred_element_type=jnp.float32)

    s = jnp.sum(acc, axis=0, keepdims=True)
    ss = jnp.sum(acc * acc, axis=0, keepdims=True)
    stats_ref[...] = jnp.concatenate([s, ss], axis=0)[None]
    y2_ref[...] = acc.reshape(1, H, W, C).astype(y2_ref.dtype)


def _affine_residual_relu_kernel(y_ref, x_ref, sc_ref, sh_ref, o_ref):
    o_ref[...] = jnp.maximum(y_ref[...] * sc_ref[...] + sh_ref[...] + x_ref[...], 0.0)


# --------------------------------------------------------------------------- stage wrappers
def _conv1x1_stats(x2d, w, tm, out_dtype):
    R, K = x2d.shape
    Cout = w.shape[1]
    nt = R // tm
    ib = jnp.dtype(x2d.dtype).itemsize
    wb = jnp.dtype(w.dtype).itemsize
    ob = jnp.dtype(out_dtype).itemsize
    need = 2 * (tm * K * ib + tm * Cout * ob + 2 * Cout * 4) + K * Cout * wb
    y, parts = pl.pallas_call(
        _conv1x1_stats_kernel,
        out_shape=(jax.ShapeDtypeStruct((R, Cout), out_dtype),
                   jax.ShapeDtypeStruct((nt, 2, Cout), jnp.float32)),
        grid=(nt,),
        in_specs=[pl.BlockSpec((tm, K), lambda i: (i, 0)),
                  pl.BlockSpec((K, Cout), lambda i: (0, 0))],
        out_specs=(pl.BlockSpec((tm, Cout), lambda i: (i, 0)),
                   pl.BlockSpec((1, 2, Cout), lambda i: (i, 0, 0))),
        compiler_params=pltpu.CompilerParams(
            dimension_semantics=("parallel",),
            vmem_limit_bytes=_vmem_limit(need)),
        cost_estimate=pl.CostEstimate(
            flops=2 * R * K * Cout + 4 * R * Cout,
            transcendentals=0,
            bytes_accessed=R * K * ib + R * Cout * ob + K * Cout * wb),
    )(x2d, w)
    return y, parts.sum(axis=0)


def _bn_conv3x3_stats(y1_4d, sc1, sh1, w2_p, act_dtype):
    N, H, W, C = y1_4d.shape
    ab = jnp.dtype(act_dtype).itemsize
    need = (2 * (2 * H * W * C * ab + 2 * C * 4)
            + 9 * C * C * ab + 2 * C * 4
            + (H + 2) * (W + 2) * C * ab
            + H * W * C * 4)
    y2, parts = pl.pallas_call(
        functools.partial(_bn_conv3x3_stats_kernel, H, W),
        out_shape=(jax.ShapeDtypeStruct((N, H, W, C), act_dtype),
                   jax.ShapeDtypeStruct((N, 2, C), jnp.float32)),
        grid=(N,),
        in_specs=[pl.BlockSpec((1, H, W, C), lambda n: (n, 0, 0, 0)),
                  pl.BlockSpec((1, C), lambda n: (0, 0)),
                  pl.BlockSpec((1, C), lambda n: (0, 0)),
                  pl.BlockSpec((3, 3, C, C), lambda n: (0, 0, 0, 0))],
        out_specs=(pl.BlockSpec((1, H, W, C), lambda n: (n, 0, 0, 0)),
                   pl.BlockSpec((1, 2, C), lambda n: (n, 0, 0))),
        scratch_shapes=[pltpu.VMEM((H + 2, W + 2, C), act_dtype)],
        compiler_params=pltpu.CompilerParams(
            dimension_semantics=("parallel",),
            vmem_limit_bytes=_vmem_limit(need)),
        cost_estimate=pl.CostEstimate(
            flops=2 * N * H * W * 9 * C * C,
            transcendentals=0,
            bytes_accessed=2 * N * H * W * C * ab + 9 * C * C * ab),
    )(y1_4d, sc1, sh1, w2_p)
    return y2, parts.sum(axis=0)


def _bn_residual_relu(y3, x_p, sc3, sh3, tm):
    R, C = y3.shape
    nt = R // tm
    need = 2 * (3 * tm * C * 4 + 2 * C * 4)
    return pl.pallas_call(
        _affine_residual_relu_kernel,
        out_shape=jax.ShapeDtypeStruct((R, C), jnp.float32),
        grid=(nt,),
        in_specs=[pl.BlockSpec((tm, C), lambda i: (i, 0)),
                  pl.BlockSpec((tm, C), lambda i: (i, 0)),
                  pl.BlockSpec((1, C), lambda i: (0, 0)),
                  pl.BlockSpec((1, C), lambda i: (0, 0))],
        out_specs=pl.BlockSpec((tm, C), lambda i: (i, 0)),
        compiler_params=pltpu.CompilerParams(
            dimension_semantics=("parallel",),
            vmem_limit_bytes=_vmem_limit(need)),
    )(y3, x_p, sc3, sh3)


# --------------------------------------------------------------------------- full block
def _block_forward_impl(x, params, matmul_dtype):
    (w1, b1, g1, be1, w2, b2, g2, be2, w3, b3, g3, be3) = params
    del b1, b2, b3  # conv biases: per-channel constants, exactly cancelled by the
    #                 training-mode BN mean subtraction that follows every conv.
    N, H, W, Cin = x.shape
    C = w1.shape[1]
    Cx = w3.shape[1]
    if Cin != Cx:
        raise ValueError("identity residual path requires in_channels == 4*out_channels")
    NHW = N * H * W
    f32 = jnp.float32

    Cp = _round_up(C, LANE)       # lane-dense (128-multiple) padded channel dims
    Cip = _round_up(Cin, LANE)

    # ---- pad parameters to lane-dense shapes (zeros in padded channels) ------------
    w1_p = jnp.zeros((Cip, Cp), f32).at[:Cin, :C].set(w1).astype(matmul_dtype)
    w2_p = jnp.zeros((3, 3, Cp, Cp), f32).at[:, :, :C, :C].set(w2).astype(matmul_dtype)
    w3_p = jnp.zeros((Cp, Cip), f32).at[:C, :Cx].set(w3)   # bn2 scale folded in below
    g1p = jnp.zeros((Cp,), f32).at[:C].set(g1.reshape(-1))
    be1p = jnp.zeros((Cp,), f32).at[:C].set(be1.reshape(-1))
    g2p = jnp.zeros((Cp,), f32).at[:C].set(g2.reshape(-1))
    be2p = jnp.zeros((Cp,), f32).at[:C].set(be2.reshape(-1))
    g3p = jnp.zeros((Cip,), f32).at[:Cx].set(g3.reshape(-1))
    be3p = jnp.zeros((Cip,), f32).at[:Cx].set(be3.reshape(-1))

    x_p = jnp.zeros((NHW, Cip), f32).at[:, :Cin].set(x.reshape(NHW, Cin))
    x_mm = x_p.astype(matmul_dtype)

    tm = _row_tile(NHW)

    # ---- conv1 (1x1) + bn1 statistics ----------------------------------------------
    y1, stats1 = _conv1x1_stats(x_mm, w1_p, tm, out_dtype=matmul_dtype)
    sc1, sh1 = _affine_from_stats(stats1, g1p, be1p, NHW)

    # ---- bn1 affine + conv2 (3x3, pad=1) + bn2 statistics --------------------------
    y2_4d, stats2 = _bn_conv3x3_stats(y1.reshape(N, H, W, Cp),
                                      sc1.reshape(1, Cp), sh1.reshape(1, Cp),
                                      w2_p, matmul_dtype)
    sc2, _sh2 = _affine_from_stats(stats2, g2p, be2p, NHW)
    # bn2 shift -> per-channel constant through the 1x1 conv3 -> cancelled by bn3's
    # mean subtraction, so only the scale needs to be folded into w3.
    w3_folded = (sc2[:, None] * w3_p).astype(matmul_dtype)

    # ---- conv3 (1x1, bn2 scale folded) + bn3 statistics -----------------------------
    y3, stats3 = _conv1x1_stats(y2_4d.reshape(NHW, Cp), w3_folded, tm,
                                out_dtype=jnp.float32)
    sc3, sh3 = _affine_from_stats(stats3, g3p, be3p, NHW)

    # ---- bn3 affine + identity residual + ReLU --------------------------------------
    out = _bn_residual_relu(y3, x_p, sc3.reshape(1, Cip), sh3.reshape(1, Cip), tm)
    return out[:, :Cx].reshape(N, H, W, Cx)


@functools.partial(jax.jit, static_argnames=("dtype_name",))
def _block_forward_jit(x, params, *, dtype_name):
    return _block_forward_impl(x, params, jnp.dtype(dtype_name))


def block_forward(x, params, *, matmul_dtype=jnp.bfloat16):
    """x: [N, H, W, Cin] float32 (NHWC), Cin == 4 * out_channels.

    matmul_dtype is the MXU input dtype (bf16 by default: MXU-native on v5e/v6e/v7x,
    half the activation/weight footprint); accumulation and BN statistics stay f32.
    """
    return _block_forward_jit(x, params, dtype_name=jnp.dtype(matmul_dtype).name)


# --------------------------------------------------------------------------- reference
def ref_block(x, params):
    """Pure-JAX reference (lax.conv, HIGHEST precision). Keeps the conv biases like
    PyTorch; the Pallas path drops them since training-mode BN cancels them exactly."""
    (w1, b1, g1, be1, w2, b2, g2, be2, w3, b3, g3, be3) = params
    dn = ("NHWC", "HWIO", "NHWC")
    hi = jax.lax.Precision.HIGHEST

    def bn(y, g, b):
        m = y.mean(axis=(0, 1, 2), keepdims=True)
        v = ((y - m) ** 2).mean(axis=(0, 1, 2), keepdims=True)
        return (y - m) / jnp.sqrt(v + EPS) * g.reshape(1, 1, 1, -1) + b.reshape(1, 1, 1, -1)

    y = jax.lax.conv_general_dilated(x, w1.reshape(1, 1, *w1.shape), (1, 1), "VALID",
                                     dimension_numbers=dn, precision=hi) + b1.reshape(1, 1, 1, -1)
    y = bn(y, g1, be1)
    y = jax.lax.conv_general_dilated(y, w2, (1, 1), "SAME",
                                     dimension_numbers=dn, precision=hi) + b2.reshape(1, 1, 1, -1)
    y = bn(y, g2, be2)
    y = jax.lax.conv_general_dilated(y, w3.reshape(1, 1, *w3.shape), (1, 1), "VALID",
                                     dimension_numbers=dn, precision=hi) + b3.reshape(1, 1, 1, -1)
    y = bn(y, g3, be3)
    return jnp.maximum(y + x, 0.0)


if __name__ == "__main__":
    N, H, W = 2, 8, 8
    C_out = 8                 # out_channels
    C_in = 4 * C_out          # expansion=4; identity residual requires Cin == 4*out_channels

    ks = jax.random.split(jax.random.PRNGKey(0), 13)
    x = jax.random.normal(ks[0], (N, H, W, C_in), jnp.float32)

    w1 = 0.1 * jax.random.normal(ks[1], (C_in, C_out), jnp.float32)          # conv1 1x1
    b1 = 0.1 * jax.random.normal(ks[2], (C_out,), jnp.float32)
    g1 = 1.0 + 0.1 * jax.random.normal(ks[3], (C_out,), jnp.float32)
    be1 = 0.1 * jax.random.normal(ks[4], (C_out,), jnp.float32)

    w2 = 0.1 * jax.random.normal(ks[5], (3, 3, C_out, C_out), jnp.float32)   # conv2 3x3, HWIO
    b2 = 0.1 * jax.random.normal(ks[6], (C_out,), jnp.float32)
    g2 = 1.0 + 0.1 * jax.random.normal(ks[7], (C_out,), jnp.float32)
    be2 = 0.1 * jax.random.normal(ks[8], (C_out,), jnp.float32)

    w3 = 0.1 * jax.random.normal(ks[9], (C_out, 4 * C_out), jnp.float32)     # conv3 1x1
    b3 = 0.1 * jax.random.normal(ks[10], (4 * C_out,), jnp.float32)
    g3 = 1.0 + 0.1 * jax.random.normal(ks[11], (4 * C_out,), jnp.float32)
    be3 = 0.1 * jax.random.normal(ks[12], (4 * C_out,), jnp.float32)

    params = (w1, b1, g1, be1, w2, b2, g2, be2, w3, b3, g3, be3)

    ref = jax.block_until_ready(ref_block(x, params))

    # f32 MXU path: tight validation of the conv/BN/residual algorithm.
    out_f32 = jax.block_until_ready(block_forward(x, params, matmul_dtype=jnp.float32))
    assert out_f32.shape == (N, H, W, 4 * C_out)
    assert bool(jnp.allclose(out_f32, ref, rtol=5e-3, atol=5e-3)), "f32 path mismatch vs reference"

    # default bf16 MXU path (production): looser tolerance for bf16 operand rounding.
    out_bf16 = jax.block_until_ready(block_forward(x, params))
    assert out_bf16.shape == (N, H, W, 4 * C_out)
    assert bool(jnp.allclose(out_bf16, ref, rtol=1e-1, atol=1e-1)), "bf16 path mismatch vs reference"

    print("KERNEL_OK")
</pallas_src>

<mosaic_0001>
module attributes {stable_mosaic.version = 11 : i64} {
  func.func @_conv1x1_stats_kernel(%arg0: i32, %arg1: memref<128x128xf32, #tpu.memory_space<vmem>>, %arg2: memref<128x128xf32, #tpu.memory_space<vmem>>, %arg3: memref<128x128xf32, #tpu.memory_space<vmem>>, %arg4: memref<1x2x128xf32, #tpu.memory_space<vmem>>) attributes {dimension_semantics = [#tpu.dimension_semantics<parallel>], iteration_bounds = array<i64: 1>, scalar_prefetch = 0 : i64, scratch_operands = 0 : i64, tpu.core_type = #tpu.core_type<tc>, window_params = [{transform_indices = @transform_0, window_bounds = array<i64: 128, 128>}, {pipeline_mode = #tpu.pipeline_mode<synchronous>, transform_indices = @transform_1, window_bounds = array<i64: 128, 128>}, {transform_indices = @transform_2, window_bounds = array<i64: 128, 128>}, {transform_indices = @transform_3, window_bounds = array<i64: 1, 2, 128>}]} {
    %c0 = arith.constant 0 : index
    %c0_0 = arith.constant 0 : index
    %0 = vector.load %arg1[%c0, %c0_0] : memref<128x128xf32, #tpu.memory_space<vmem>>, vector<128x128xf32>
    %c0_1 = arith.constant 0 : index
    %c0_2 = arith.constant 0 : index
    %1 = vector.load %arg2[%c0_1, %c0_2] : memref<128x128xf32, #tpu.memory_space<vmem>>, vector<128x128xf32>
    %cst = arith.constant dense<0.000000e+00> : vector<128x128xf32>
    %2 = tpu.matmul %0, %1, %cst {dimension_numbers = #tpu.dot_dimension_numbers<[1], [0], [0], [1], [0, 0, 1, 1], [], []>} : vector<128x128xf32>, vector<128x128xf32>, vector<128x128xf32> -> vector<128x128xf32>
    %cst_3 = arith.constant dense<0.000000e+00> : vector<128xf32>
    %3 = vector.multi_reduction <add>, %2, %cst_3 [0] : vector<128x128xf32> to vector<128xf32>
    %4 = vector.shape_cast %3 : vector<128xf32> to vector<1x128xf32>
    %5 = arith.mulf %2, %2 : vector<128x128xf32>
    %cst_4 = arith.constant dense<0.000000e+00> : vector<128xf32>
    %6 = vector.multi_reduction <add>, %5, %cst_4 [0] : vector<128x128xf32> to vector<128xf32>
    %7 = vector.shape_cast %6 : vector<128xf32> to vector<1x128xf32>
    %8 = tpu.concatenate %4, %7 in 0 : vector<1x128xf32>, vector<1x128xf32> -> vector<2x128xf32>
    %9 = vector.shape_cast %8 : vector<2x128xf32> to vector<1x2x128xf32>
    %c0_5 = arith.constant 0 : index
    %c0_6 = arith.constant 0 : index
    %c0_7 = arith.constant 0 : index
    %10 = vector.load %arg4[%c0_5, %c0_6, %c0_7] : memref<1x2x128xf32, #tpu.memory_space<vmem>>, vector<1x2x128xf32>
    tpu.vector_store %arg4[%c0_5, %c0_6, %c0_7], %9 {strides = array<i32>} : memref<1x2x128xf32, #tpu.memory_space<vmem>>, vector<1x2x128xf32>,
    %c0_8 = arith.constant 0 : index
    %c0_9 = arith.constant 0 : index
    %11 = vector.load %arg3[%c0_8, %c0_9] : memref<128x128xf32, #tpu.memory_space<vmem>>, vector<128x128xf32>
    tpu.vector_store %arg3[%c0_8, %c0_9], %2 {strides = array<i32>} : memref<128x128xf32, #tpu.memory_space<vmem>>, vector<128x128xf32>,
    return
  }
  func.func @transform_0(%arg0: i32) -> (i32, i32) {
    %c0_i32 = arith.constant 0 : i32
    %c0_i32_0 = arith.constant 0 : i32
    return %arg0, %c0_i32 : i32, i32
  }
  func.func @transform_1(%arg0: i32) -> (i32, i32) {
    %c0_i32 = arith.constant 0 : i32
    %c0_i32_0 = arith.constant 0 : i32
    %c0_i32_1 = arith.constant 0 : i32
    return %c0_i32, %c0_i32_0 : i32, i32
  }
  func.func @transform_2(%arg0: i32) -> (i32, i32) {
    %c0_i32 = arith.constant 0 : i32
    %c0_i32_0 = arith.constant 0 : i32
    return %arg0, %c0_i32 : i32, i32
  }
  func.func @transform_3(%arg0: i32) -> (i32, i32, i32) {
    %c0_i32 = arith.constant 0 : i32
    %c0_i32_0 = arith.constant 0 : i32
    %c0_i32_1 = arith.constant 0 : i32
    return %arg0, %c0_i32, %c0_i32_0 : i32, i32, i32
  }
}

module attributes {stable_mosaic.version = 11 : i64} {
  func.func @_bn_conv3x3_stats_kernel(%arg0: i32, %arg1: memref<1x8x8x128xf32, #tpu.memory_space<vmem>>, %arg2: memref<1x128xf32, #tpu.memory_space<vmem>>, %arg3: memref<1x128xf32, #tpu.memory_space<vmem>>, %arg4: memref<3x3x128x128xf32, #tpu.memory_space<vmem>>, %arg5: memref<1x8x8x128xf32, #tpu.memory_space<vmem>>, %arg6: memref<1x2x128xf32, #tpu.memory_space<vmem>>, %arg7: memref<10x10x128xf32, #tpu.memory_space<vmem>>) attributes {dimension_semantics = [#tpu.dimension_semantics<parallel>], iteration_bounds = array<i64: 2>, scalar_prefetch = 0 : i64, scratch_operands = 1 : i64, tpu.core_type = #tpu.core_type<tc>, window_params = [{transform_indices = @transform_0, window_bounds = array<i64: 1, 8, 8, 128>}, {pipeline_mode = #tpu.pipeline_mode<synchronous>, transform_indices = @transform_1, window_bounds = array<i64: 1, 128>}, {pipeline_mode = #tpu.pipeline_mode<synchronous>, transform_indices = @transform_2, window_bounds = array<i64: 1, 128>}, {pipeline_mode = #tpu.pipeline_mode<synchronous>, transform_indices = @transform_3, window_bounds = array<i64: 3, 3, 128, 128>}, {transform_indices = @transform_4, window_bounds = array<i64: 1, 8, 8, 128>}, {transform_indices = @transform_5, window_bounds = array<i64: 1, 2, 128>}]} {
    %cst = arith.constant 0.000000e+00 : f32
    %0 = vector.broadcast %cst : f32 to vector<1x10x128xf32>
    %c0 = arith.constant 0 : index
    %c0_0 = arith.constant 0 : index
    %c0_1 = arith.constant 0 : index
    %1 = vector.load %arg7[%c0, %c0_0, %c0_1] : memref<10x10x128xf32, #tpu.memory_space<vmem>>, vector<1x10x128xf32>
    tpu.vector_store %arg7[%c0, %c0_0, %c0_1], %0 {strides = array<i32>} : memref<10x10x128xf32, #tpu.memory_space<vmem>>, vector<1x10x128xf32>,
    %cst_2 = arith.constant 0.000000e+00 : f32
    %2 = vector.broadcast %cst_2 : f32 to vector<1x10x128xf32>
    %c9 = arith.constant 9 : index
    %c0_3 = arith.constant 0 : index
    %c0_4 = arith.constant 0 : index
    %3 = vector.load %arg7[%c9, %c0_3, %c0_4] : memref<10x10x128xf32, #tpu.memory_space<vmem>>, vector<1x10x128xf32>
    tpu.vector_store %arg7[%c9, %c0_3, %c0_4], %2 {strides = array<i32>} : memref<10x10x128xf32, #tpu.memory_space<vmem>>, vector<1x10x128xf32>,
    %cst_5 = arith.constant 0.000000e+00 : f32
    %4 = vector.broadcast %cst_5 : f32 to vector<10x1x128xf32>
    %c0_6 = arith.constant 0 : index
    %c0_7 = arith.constant 0 : index
    %c0_8 = arith.constant 0 : index
    %5 = vector.load %arg7[%c0_6, %c0_7, %c0_8] : memref<10x10x128xf32, #tpu.memory_space<vmem>>, vector<10x1x128xf32>
    tpu.vector_store %arg7[%c0_6, %c0_7, %c0_8], %4 {strides = array<i32>} : memref<10x10x128xf32, #tpu.memory_space<vmem>>, vector<10x1x128xf32>,
    %cst_9 = arith.constant 0.000000e+00 : f32
    %6 = vector.broadcast %cst_9 : f32 to vector<10x1x128xf32>
    %c0_10 = arith.constant 0 : index
    %c9_11 = arith.constant 9 : index
    %c0_12 = arith.constant 0 : index
    %7 = vector.load %arg7[%c0_10, %c9_11, %c0_12] : memref<10x10x128xf32, #tpu.memory_space<vmem>>, vector<10x1x128xf32>
    tpu.vector_store %arg7[%c0_10, %c9_11, %c0_12], %6 {strides = array<i32>} : memref<10x10x128xf32, #tpu.memory_space<vmem>>, vector<10x1x128xf32>,
    %c0_13 = arith.constant 0 : index
    %c0_14 = arith.constant 0 : index
    %c0_15 = arith.constant 0 : index
    %c0_16 = arith.constant 0 : index
    %8 = vector.load %arg1[%c0_13, %c0_14, %c0_15, %c0_16] : memref<1x8x8x128xf32, #tpu.memory_space<vmem>>, vector<1x8x8x128xf32>
    %9 = vector.shape_cast %8 : vector<1x8x8x128xf32> to vector<8x8x128xf32>
    %c0_17 = arith.constant 0 : index
    %c0_18 = arith.constant 0 : index
    %10 = vector.load %arg2[%c0_17, %c0_18] : memref<1x128xf32, #tpu.memory_space<vmem>>, vector<1x128xf32>
    %11 = vector.shape_cast %10 : vector<1x128xf32> to vector<1x1x128xf32>
    %12 = vector.broadcast %11 : vector<1x1x128xf32> to vector<8x8x128xf32>
    %13 = arith.mulf %9, %12 : vector<8x8x128xf32>
    %c0_19 = arith.constant 0 : index
    %c0_20 = arith.constant 0 : index
    %14 = vector.load %arg3[%c0_19, %c0_20] : memref<1x128xf32, #tpu.memory_space<vmem>>, vector<1x128xf32>
    %15 = vector.shape_cast %14 : vector<1x128xf32> to vector<1x1x128xf32>
    %16 = vector.broadcast %15 : vector<1x1x128xf32> to vector<8x8x128xf32>
    %17 = arith.addf %13, %16 : vector<8x8x128xf32>
    %c1 = arith.constant 1 : index
    %c1_21 = arith.constant 1 : index
    %c0_22 = arith.constant 0 : index
    %18 = vector.load %arg7[%c1, %c1_21, %c0_22] : memref<10x10x128xf32, #tpu.memory_space<vmem>>, vector<8x8x128xf32>
    tpu.vector_store %arg7[%c1, %c1_21, %c0_22], %17 {strides = array<i32>} : memref<10x10x128xf32, #tpu.memory_space<vmem>>, vector<8x8x128xf32>,
    %cst_23 = arith.constant 0.000000e+00 : f32
    %19 = vector.broadcast %cst_23 : f32 to vector<64x128xf32>
    %c0_24 = arith.constant 0 : index
    %c0_25 = arith.constant 0 : index
    %c0_26 = arith.constant 0 : index
    %20 = vector.load %arg7[%c0_24, %c0_25, %c0_26] : memref<10x10x128xf32, #tpu.memory_space<vmem>>, vector<8x8x128xf32>
    %21 = vector.shape_cast %20 : vector<8x8x128xf32> to vector<64x128xf32>
    %c0_27 = arith.constant 0 : index
    %c0_28 = arith.constant 0 : index
    %c0_29 = arith.constant 0 : index
    %c0_30 = arith.constant 0 : index
    %22 = vector.load %arg4[%c0_27, %c0_28, %c0_29, %c0_30] : memref<3x3x128x128xf32, #tpu.memory_space<vmem>>, vector<1x1x128x128xf32>
    %23 = vector.shape_cast %22 : vector<1x1x128x128xf32> to vector<128x128xf32>
    %cst_31 = arith.constant dense<0.000000e+00> : vector<64x128xf32>
    %24 = tpu.matmul %21, %23, %cst_31 {dimension_numbers = #tpu.dot_dimension_numbers<[1], [0], [0], [1], [0, 0, 1, 1], [], []>} : vector<64x128xf32>, vector<128x128xf32>, vector<64x128xf32> -> vector<64x128xf32>
    %25 = arith.addf %19, %24 : vector<64x128xf32>
    %c0_32 = arith.constant 0 : index
    %c1_33 = arith.constant 1 : index
    %c0_34 = arith.constant 0 : index
    %26 = vector.load %arg7[%c0_32, %c1_33, %c0_34] : memref<10x10x128xf32, #tpu.memory_space<vmem>>, vector<8x8x128xf32>
    %27 = vector.shape_cast %26 : vector<8x8x128xf32> to vector<64x128xf32>
    %c0_35 = arith.constant 0 : index
    %c1_36 = arith.constant 1 : index
    %c0_37 = arith.constant 0 : index
    %c0_38 = arith.constant 0 : index
    %28 = vector.load %arg4[%c0_35, %c1_36, %c0_37, %c0_38] : memref<3x3x128x128xf32, #tpu.memory_space<vmem>>, vector<1x1x128x128xf32>
    %29 = vector.shape_cast %28 : vector<1x1x128x128xf32> to vector<128x128xf32>
    %cst_39 = arith.constant dense<0.000000e+00> : vector<64x128xf32>
    %30 = tpu.matmul %27, %29, %cst_39 {dimension_numbers = #tpu.dot_dimension_numbers<[1], [0], [0], [1], [0, 0, 1, 1], [], []>} : vector<64x128xf32>, vector<128x128xf32>, vector<64x128xf32> -> vector<64x128xf32>
    %31 = arith.addf %25, %30 : vector<64x128xf32>
    %c0_40 = arith.constant 0 : index
    %c2 = arith.constant 2 : index
    %c0_41 = arith.constant 0 : index
    %32 = vector.load %arg7[%c0_40, %c2, %c0_41] : memref<10x10x128xf32, #tpu.memory_space<vmem>>, vector<8x8x128xf32>
    %33 = vector.shape_cast %32 : vector<8x8x128xf32> to vector<64x128xf32>
    %c0_42 = arith.constant 0 : index
    %c2_43 = arith.constant 2 : index
    %c0_44 = arith.constant 0 : index
    %c0_45 = arith.constant 0 : index
    %34 = vector.load %arg4[%c0_42, %c2_43, %c0_44, %c0_45] : memref<3x3x128x128xf32, #tpu.memory_space<vmem>>, vector<1x1x128x128xf32>
    %35 = vector.shape_cast %34 : vector<1x1x128x128xf32> to vector<128x128xf32>
    %cst_46 = arith.constant dense<0.000000e+00> : vector<64x128xf32>
    %36 = tpu.matmul %33, %35, %cst_46 {dimension_numbers = #tpu.dot_dimension_numbers<[1], [0], [0], [1], [0, 0, 1, 1], [], []>} : vector<64x128xf32>, vector<128x128xf32>, vector<64x128xf32> -> vector<64x128xf32>
    %37 = arith.addf %31, %36 : vector<64x128xf32>
    %c1_47 = arith.constant 1 : index
    %c0_48 = arith.constant 0 : index
    %c0_49 = arith.constant 0 : index
    %38 = vector.load %arg7[%c1_47, %c0_48, %c0_49] : memref<10x10x128xf32, #tpu.memory_space<vmem>>, vector<8x8x128xf32>
    %39 = vector.shape_cast %38 : vector<8x8x128xf32> to vector<64x128xf32>
    %c1_50 = arith.constant 1 : index
    %c0_51 = arith.constant 0 : index
    %c0_52 = arith.constant 0 : index
    %c0_53 = arith.constant 0 : index
    %40 = vector.load %arg4[%c1_50, %c0_51, %c0_52, %c0_53] : memref<3x3x128x128xf32, #tpu.memory_space<vmem>>, vector<1x1x128x128xf32>
    %41 = vector.shape_cast %40 : vector<1x1x128x128xf32> to vector<128x128xf32>
    %cst_54 = arith.constant dense<0.000000e+00> : vector<64x128xf32>
    %42 = tpu.matmul %39, %41, %cst_54 {dimension_numbers = #tpu.dot_dimension_numbers<[1], [0], [0], [1], [0, 0, 1, 1], [], []>} : vector<64x128xf32>, vector<128x128xf32>, vector<64x128xf32> -> vector<64x128xf32>
    %43 = arith.addf %37, %42 : vector<64x128xf32>
    %c1_55 = arith.constant 1 : index
    %c1_56 = arith.constant 1 : index
    %c0_57 = arith.constant 0 : index
    %44 = vector.load %arg7[%c1_55, %c1_56, %c0_57] : memref<10x10x128xf32, #tpu.memory_space<vmem>>, vector<8x8x128xf32>
    %45 = vector.shape_cast %44 : vector<8x8x128xf32> to vector<64x128xf32>
    %c1_58 = arith.constant 1 : index
    %c1_59 = arith.constant 1 : index
    %c0_60 = arith.constant 0 : index
    %c0_61 = arith.constant 0 : index
    %46 = vector.load %arg4[%c1_58, %c1_59, %c0_60, %c0_61] : memref<3x3x128x128xf32, #tpu.memory_space<vmem>>, vector<1x1x128x128xf32>
    %47 = vector.shape_cast %46 : vector<1x1x128x128xf32> to vector<128x128xf32>
    %cst_62 = arith.constant dense<0.000000e+00> : vector<64x128xf32>
    %48 = tpu.matmul %45, %47, %cst_62 {dimension_numbers = #tpu.dot_dimension_numbers<[1], [0], [0], [1], [0, 0, 1, 1], [], []>} : vector<64x128xf32>, vector<128x128xf32>, vector<64x128xf32> -> vector<64x128xf32>
    %49 = arith.addf %43, %48 : vector<64x128xf32>
    %c1_63 = arith.constant 1 : index
    %c2_64 = arith.constant 2 : index
    %c0_65 = arith.constant 0 : index
    %50 = vector.load %arg7[%c1_63, %c2_64, %c0_65] : memref<10x10x128xf32, #tpu.memory_space<vmem>>, vector<8x8x128xf32>
    %51 = vector.shape_cast %50 : vector<8x8x128xf32> to vector<64x128xf32>
    %c1_66 = arith.constant 1 : index
    %c2_67 = arith.constant 2 : index
    %c0_68 = arith.constant 0 : index
    %c0_69 = arith.constant 0 : index
    %52 = vector.load %arg4[%c1_66, %c2_67, %c0_68, %c0_69] : memref<3x3x128x128xf32, #tpu.memory_space<vmem>>, vector<1x1x128x128xf32>
    %53 = vector.shape_cast %52 : vector<1x1x128x128xf32> to vector<128x128xf32>
    %cst_70 = arith.constant dense<0.000000e+00> : vector<64x128xf32>
    %54 = tpu.matmul %51, %53, %cst_70 {dimension_numbers = #tpu.dot_dimension_numbers<[1], [0], [0], [1], [0, 0, 1, 1], [], []>} : vector<64x128xf32>, vector<128x128xf32>, vector<64x128xf32> -> vector<64x128xf32>
    %55 = arith.addf %49, %54 : vector<64x128xf32>
    %c2_71 = arith.constant 2 : index
    %c0_72 = arith.constant 0 : index
    %c0_73 = arith.constant 0 : index
    %56 = vector.load %arg7[%c2_71, %c0_72, %c0_73] : memref<10x10x128xf32, #tpu.memory_space<vmem>>, vector<8x8x128xf32>
    %57 = vector.shape_cast %56 : vector<8x8x128xf32> to vector<64x128xf32>
    %c2_74 = arith.constant 2 : index
    %c0_75 = arith.constant 0 : index
    %c0_76 = arith.constant 0 : index
    %c0_77 = arith.constant 0 : index
    %58 = vector.load %arg4[%c2_74, %c0_75, %c0_76, %c0_77] : memref<3x3x128x128xf32, #tpu.memory_space<vmem>>, vector<1x1x128x128xf32>
    %59 = vector.shape_cast %58 : vector<1x1x128x128xf32> to vector<128x128xf32>
    %cst_78 = arith.constant dense<0.000000e+00> : vector<64x128xf32>
    %60 = tpu.matmul %57, %59, %cst_78 {dimension_numbers = #tpu.dot_dimension_numbers<[1], [0], [0], [1], [0, 0, 1, 1], [], []>} : vector<64x128xf32>, vector<128x128xf32>, vector<64x128xf32> -> vector<64x128xf32>
    %61 = arith.addf %55, %60 : vector<64x128xf32>
    %c2_79 = arith.constant 2 : index
    %c1_80 = arith.constant 1 : index
    %c0_81 = arith.constant 0 : index
    %62 = vector.load %arg7[%c2_79, %c1_80, %c0_81] : memref<10x10x128xf32, #tpu.memory_space<vmem>>, vector<8x8x128xf32>
    %63 = vector.shape_cast %62 : vector<8x8x128xf32> to vector<64x128xf32>
    %c2_82 = arith.constant 2 : index
    %c1_83 = arith.constant 1 : index
    %c0_84 = arith.constant 0 : index
    %c0_85 = arith.constant 0 : index
    %64 = vector.load %arg4[%c2_82, %c1_83, %c0_84, %c0_85] : memref<3x3x128x128xf32, #tpu.memory_space<vmem>>, vector<1x1x128x128xf32>
    %65 = vector.shape_cast %64 : vector<1x1x128x128xf32> to vector<128x128xf32>
    %cst_86 = arith.constant dense<0.000000e+00> : vector<64x128xf32>
    %66 = tpu.matmul %63, %65, %cst_86 {dimension_numbers = #tpu.dot_dimension_numbers<[1], [0], [0], [1], [0, 0, 1, 1], [], []>} : vector<64x128xf32>, vector<128x128xf32>, vector<64x128xf32> -> vector<64x128xf32>
    %67 = arith.addf %61, %66 : vector<64x128xf32>
    %c2_87 = arith.constant 2 : index
    %c2_88 = arith.constant 2 : index
    %c0_89 = arith.constant 0 : index
    %68 = vector.load %arg7[%c2_87, %c2_88, %c0_89] : memref<10x10x128xf32, #tpu.memory_space<vmem>>, vector<8x8x128xf32>
    %69 = vector.shape_cast %68 : vector<8x8x128xf32> to vector<64x128xf32>
    %c2_90 = arith.constant 2 : index
    %c2_91 = arith.constant 2 : index
    %c0_92 = arith.constant 0 : index
    %c0_93 = arith.constant 0 : index
    %70 = vector.load %arg4[%c2_90, %c2_91, %c0_92, %c0_93] : memref<3x3x128x128xf32, #tpu.memory_space<vmem>>, vector<1x1x128x128xf32>
    %71 = vector.shape_cast %70 : vector<1x1x128x128xf32> to vector<128x128xf32>
    %cst_94 = arith.constant dense<0.000000e+00> : vector<64x128xf32>
    %72 = tpu.matmul %69, %71, %cst_94 {dimension_numbers = #tpu.dot_dimension_numbers<[1], [0], [0], [1], [0, 0, 1, 1], [], []>} : vector<64x128xf32>, vector<128x128xf32>, vector<64x128xf32> -> vector<64x128xf32>
    %73 = arith.addf %67, %72 : vector<64x128xf32>
    %cst_95 = arith.constant dense<0.000000e+00> : vector<128xf32>
    %74 = vector.multi_reduction <add>, %73, %cst_95 [0] : vector<64x128xf32> to vector<128xf32>
    %75 = vector.shape_cast %74 : vector<128xf32> to vector<1x128xf32>
    %76 = arith.mulf %73, %73 : vector<64x128xf32>
    %cst_96 = arith.constant dense<0.000000e+00> : vector<128xf32>
    %77 = vector.multi_reduction <add>, %76, %cst_96 [0] : vector<64x128xf32> to vector<128xf32>
    %78 = vector.shape_cast %77 : vector<128xf32> to vector<1x128xf32>
    %79 = tpu.concatenate %75, %78 in 0 : vector<1x128xf32>, vector<1x128xf32> -> vector<2x128xf32>
    %80 = vector.shape_cast %79 : vector<2x128xf32> to vector<1x2x128xf32>
    %c0_97 = arith.constant 0 : index
    %c0_98 = arith.constant 0 : index
    %c0_99 = arith.constant 0 : index
    %81 = vector.load %arg6[%c0_97, %c0_98, %c0_99] : memref<1x2x128xf32, #tpu.memory_space<vmem>>, vector<1x2x128xf32>
    tpu.vector_store %arg6[%c0_97, %c0_98, %c0_99], %80 {strides = array<i32>} : memref<1x2x128xf32, #tpu.memory_space<vmem>>, vector<1x2x128xf32>,
    %82 = vector.shape_cast %73 : vector<64x128xf32> to vector<1x8x8x128xf32>
    %c0_100 = arith.constant 0 : index
    %c0_101 = arith.constant 0 : index
    %c0_102 = arith.constant 0 : index
    %c0_103 = arith.constant 0 : index
    %83 = vector.load %arg5[%c0_100, %c0_101, %c0_102, %c0_103] : memref<1x8x8x128xf32, #tpu.memory_space<vmem>>, vector<1x8x8x128xf32>
    tpu.vector_store %arg5[%c0_100, %c0_101, %c0_102, %c0_103], %82 {strides = array<i32>} : memref<1x8x8x128xf32, #tpu.memory_space<vmem>>, vector<1x8x8x128xf32>,
    return
  }
  func.func @transform_0(%arg0: i32) -> (i32, i32, i32, i32) {
    %c0_i32 = arith.constant 0 : i32
    %c0_i32_0 = arith.constant 0 : i32
    %c0_i32_1 = arith.constant 0 : i32
    %c0_i32_2 = arith.constant 0 : i32
    return %arg0, %c0_i32, %c0_i32_0, %c0_i32_1 : i32, i32, i32, i32
  }
  func.func @transform_1(%arg0: i32) -> (i32, i32) {
    %c0_i32 = arith.constant 0 : i32
    %c0_i32_0 = arith.constant 0 : i32
    %c0_i32_1 = arith.constant 0 : i32
    return %c0_i32, %c0_i32_0 : i32, i32
  }
  func.func @transform_2(%arg0: i32) -> (i32, i32) {
    %c0_i32 = arith.constant 0 : i32
    %c0_i32_0 = arith.constant 0 : i32
    %c0_i32_1 = arith.constant 0 : i32
    return %c0_i32, %c0_i32_0 : i32, i32
  }
  func.func @transform_3(%arg0: i32) -> (i32, i32, i32, i32) {
    %c0_i32 = arith.constant 0 : i32
    %c0_i32_0 = arith.constant 0 : i32
    %c0_i32_1 = arith.constant 0 : i32
    %c0_i32_2 = arith.constant 0 : i32
    %c0_i32_3 = arith.constant 0 : i32
    return %c0_i32, %c0_i32_0, %c0_i32_1, %c0_i32_2 : i32, i32, i32, i32
  }
  func.func @transform_4(%arg0: i32) -> (i32, i32, i32, i32) {
    %c0_i32 = arith.constant 0 : i32
    %c0_i32_0 = arith.constant 0 : i32
    %c0_i32_1 = arith.constant 0 : i32
    %c0_i32_2 = arith.constant 0 : i32
    return %arg0, %c0_i32, %c0_i32_0, %c0_i32_1 : i32, i32, i32, i32
  }
  func.func @transform_5(%arg0: i32) -> (i32, i32, i32) {
    %c0_i32 = arith.constant 0 : i32
    %c0_i32_0 = arith.constant 0 : i32
    %c0_i32_1 = arith.constant 0 : i32
    return %arg0, %c0_i32, %c0_i32_0 : i32, i32, i32
  }
}

module attributes {stable_mosaic.version = 11 : i64} {
  func.func @_affine_residual_relu_kernel(%arg0: i32, %arg1: memref<128x128xf32, #tpu.memory_space<vmem>>, %arg2: memref<128x128xf32, #tpu.memory_space<vmem>>, %arg3: memref<1x128xf32, #tpu.memory_space<vmem>>, %arg4: memref<1x128xf32, #tpu.memory_space<vmem>>, %arg5: memref<128x128xf32, #tpu.memory_space<vmem>>) attributes {dimension_semantics = [#tpu.dimension_semantics<parallel>], iteration_bounds = array<i64: 1>, scalar_prefetch = 0 : i64, scratch_operands = 0 : i64, tpu.core_type = #tpu.core_type<tc>, window_params = [{transform_indices = @transform_0, window_bounds = array<i64: 128, 128>}, {transform_indices = @transform_1, window_bounds = array<i64: 128, 128>}, {pipeline_mode = #tpu.pipeline_mode<synchronous>, transform_indices = @transform_2, window_bounds = array<i64: 1, 128>}, {pipeline_mode = #tpu.pipeline_mode<synchronous>, transform_indices = @transform_3, window_bounds = array<i64: 1, 128>}, {transform_indices = @transform_4, window_bounds = array<i64: 128, 128>}]} {
    %c0 = arith.constant 0 : index
    %c0_0 = arith.constant 0 : index
    %0 = vector.load %arg1[%c0, %c0_0] : memref<128x128xf32, #tpu.memory_space<vmem>>, vector<128x128xf32>
    %c0_1 = arith.constant 0 : index
    %c0_2 = arith.constant 0 : index
    %1 = vector.load %arg3[%c0_1, %c0_2] : memref<1x128xf32, #tpu.memory_space<vmem>>, vector<1x128xf32>
    %2 = vector.broadcast %1 : vector<1x128xf32> to vector<128x128xf32>
    %3 = arith.mulf %0, %2 : vector<128x128xf32>
    %c0_3 = arith.constant 0 : index
    %c0_4 = arith.constant 0 : index
    %4 = vector.load %arg4[%c0_3, %c0_4] : memref<1x128xf32, #tpu.memory_space<vmem>>, vector<1x128xf32>
    %5 = vector.broadcast %4 : vector<1x128xf32> to vector<128x128xf32>
    %6 = arith.addf %3, %5 : vector<128x128xf32>
    %c0_5 = arith.constant 0 : index
    %c0_6 = arith.constant 0 : index
    %7 = vector.load %arg2[%c0_5, %c0_6] : memref<128x128xf32, #tpu.memory_space<vmem>>, vector<128x128xf32>
    %8 = arith.addf %6, %7 : vector<128x128xf32>
    %cst = arith.constant 0.000000e+00 : f32
    %9 = vector.broadcast %cst : f32 to vector<128x128xf32>
    %10 = arith.maximumf %8, %9 : vector<128x128xf32>
    %c0_7 = arith.constant 0 : index
    %c0_8 = arith.constant 0 : index
    %11 = vector.load %arg5[%c0_7, %c0_8] : memref<128x128xf32, #tpu.memory_space<vmem>>, vector<128x128xf32>
    tpu.vector_store %arg5[%c0_7, %c0_8], %10 {strides = array<i32>} : memref<128x128xf32, #tpu.memory_space<vmem>>, vector<128x128xf32>,
    return
  }
  func.func @transform_0(%arg0: i32) -> (i32, i32) {
    %c0_i32 = arith.constant 0 : i32
    %c0_i32_0 = arith.constant 0 : i32
    return %arg0, %c0_i32 : i32, i32
  }
  func.func @transform_1(%arg0: i32) -> (i32, i32) {
    %c0_i32 = arith.constant 0 : i32
    %c0_i32_0 = arith.constant 0 : i32
    return %arg0, %c0_i32 : i32, i32
  }
  func.func @transform_2(%arg0: i32) -> (i32, i32) {
    %c0_i32 = arith.constant 0 : i32
    %c0_i32_0 = arith.constant 0 : i32
    %c0_i32_1 = arith.constant 0 : i32
    return %c0_i32, %c0_i32_0 : i32, i32
  }
  func.func @transform_3(%arg0: i32) -> (i32, i32) {
    %c0_i32 = arith.constant 0 : i32
    %c0_i32_0 = arith.constant 0 : i32
    %c0_i32_1 = arith.constant 0 : i32
    return %c0_i32, %c0_i32_0 : i32, i32
  }
  func.func @transform_4(%arg0: i32) -> (i32, i32) {
    %c0_i32 = arith.constant 0 : i32
    %c0_i32_0 = arith.constant 0 : i32
    return %arg0, %c0_i32 : i32, i32
  }
}

</mosaic_0001>

<bundles_post_ra>
// kernel: _block_forward_jit.7
= control target key start
LH: loop header
LB: loop body
LE: loop exit
PB: predicated region body
PF: predicated region fallthrough
CT: control target
= control target key end

     0   :  { %s356_s0 = inlined_call_operand.vmem [shape: f32[128,128], index: 0, kind: input, shape index: {}]   ;;  %s357_s1 = inlined_call_operand.vmem [shape: f32[128,128], index: 1, kind: input, shape index: {}]   ;;  %s358_s2 = inlined_call_operand.vmem [shape: f32[1,128], index: 2, kind: input, shape index: {}]   ;;  %s359_s3 = inlined_call_operand.vmem [shape: f32[1,128], index: 3, kind: input, shape index: {}]   ;;  %s360_s4 = inlined_call_operand.hbm [shape: f32[128,128], index: 4, kind: output, shape index: {}]  }
   0x1   :  { %v18_v0 = vld [vmem:[%s356_s0] sm:$0xff]  ;;  %v19_v4 = vld [vmem:[%s356_s0 + $0x8] sm:$0xff]  ;;  %v20_v7 = vld [vmem:[%s356_s0 + $0x10] sm:$0xff] }
   0x2   :  { %v221_v1 = vld [vmem:[%s358_s2] ss:$0 sm:$0xff]  ;;  %v21_v8 = vld [vmem:[%s356_s0 + $0x18] sm:$0xff]  ;;  %v81_v10 = vld [vmem:[%s357_s1 + $0x8] sm:$0xff] }
   0x3   :  { %v226_v2 = vld [vmem:[%s359_s3] ss:$0 sm:$0xff]  ;;  %v41_v3 = vmul.f32 %v221_v1, %v18_v0  ;;  %v42_v6 = vmul.f32 %v221_v1, %v19_v4  ;;  %v43_v11 = vmul.f32 %v221_v1, %v20_v7  ;;  %v82_v12 = vld [vmem:[%s357_s1 + $0x10] sm:$0xff]  ;;  %v44_v13 = vmul.f32 %v221_v1, %v21_v8  ;;  %v83_v16 = vld [vmem:[%s357_s1 + $0x18] sm:$0xff] }
   0x4   :  { %v80_v5 = vld [vmem:[%s357_s1] sm:$0xff]  ;;  %v23_v18 = vld [vmem:[%s356_s0 + $0x28] sm:$0xff]  ;;  %v24_v19 = vld [vmem:[%s356_s0 + $0x30] sm:$0xff] }
   0x5   :  { %v64_v9 = vadd.f32 %v226_v2, %v41_v3  ;;  %v22_v14 = vld [vmem:[%s356_s0 + $0x20] sm:$0xff]  ;;  %v65_v15 = vadd.f32 %v226_v2, %v42_v6  ;;  %v66_v21 = vadd.f32 %v226_v2, %v43_v11  ;;  %v67_v22 = vadd.f32 %v226_v2, %v44_v13  ;;  %v25_v25 = vld [vmem:[%s356_s0 + $0x38] sm:$0xff]  ;;  %v85_v28 = vld [vmem:[%s357_s1 + $0x28] sm:$0xff] }
   0x6   :  { %v45_v17 = vmul.f32 %v221_v1, %v22_v14  ;;  %v84_v23 = vld [vmem:[%s357_s1 + $0x20] sm:$0xff]  ;;  %v46_v24 = vmul.f32 %v221_v1, %v23_v18  ;;  %v47_v29 = vmul.f32 %v221_v1, %v24_v19  ;;  %v48_v30 = vmul.f32 %v221_v1, %v25_v25  ;;  %v86_v36 = vld [vmem:[%s357_s1 + $0x30] sm:$0xff]  ;;  %v87_v37 = vld [vmem:[%s357_s1 + $0x38] sm:$0xff] }
   0x7   :  { %v96_v20 = vadd.f32 %v80_v5, %v64_v9  ;;  %v97_v26 = vadd.f32 %v81_v10, %v65_v15  ;;  %v26_v31 = vld [vmem:[%s356_s0 + $0x40] sm:$0xff]  ;;  %v98_v33 = vadd.f32 %v82_v12, %v66_v21  ;;  %v99_v34 = vadd.f32 %v83_v16, %v67_v22  ;;  %v27_v38 = vld [vmem:[%s356_s0 + $0x48] sm:$0xff]  ;;  %v28_v43 = vld [vmem:[%s356_s0 + $0x50] sm:$0xff] }
   0x8   :  { %v68_v27 = vadd.f32 %v226_v2, %v45_v17  ;;  %v69_v35 = vadd.f32 %v226_v2, %v46_v24  ;;  %v70_v41 = vadd.f32 %v226_v2, %v47_v29  ;;  %v71_v42 = vadd.f32 %v226_v2, %v48_v30  ;;  %v29_v44 = vld [vmem:[%s356_s0 + $0x58] sm:$0xff]  ;;  %v30_v49 = vld [vmem:[%s356_s0 + $0x60] sm:$0xff]  ;;  %v89_v55 = vld [vmem:[%s357_s1 + $0x48] sm:$0xff] }
   0x9   :  { %v112_v32 = vmax.f32 %v96_v20, 0.0  ;;  %v113_v39 = vmax.f32 %v97_v26, 0.0  ;;  %v114_v45 = vmax.f32 %v98_v33, 0.0  ;;  %v115_v46 = vmax.f32 %v99_v34, 0.0  ;;  %v88_v53 = vld [vmem:[%s357_s1 + $0x40] sm:$0xff]  ;;  %v31_v56 = vld [vmem:[%s356_s0 + $0x68] sm:$0xff] }
   0xa   :  { %v100_v40 = vadd.f32 %v84_v23, %v68_v27  ;;  %v101_v47 = vadd.f32 %v85_v28, %v69_v35  ;;  %v49_v48 = vmul.f32 %v221_v1, %v26_v31  ;;  %v102_v51 = vadd.f32 %v86_v36, %v70_v41  ;;  %v32_v61 = vld [vmem:[%s356_s0 + $0x70] sm:$0xff]  ;;  %v33_v62 = vld [vmem:[%s356_s0 + $0x78] sm:$0xff] }
   0xb   :  { %128 = vst [vmem:[#allocation2] sm:$0xff] %v112_v32  ;;  %129 = vst [vmem:[#allocation2 + $0x8] sm:$0xff] %v113_v39  ;;  %v103_v52 = vadd.f32 %v87_v37, %v71_v42  ;;  %v50_v54 = vmul.f32 %v221_v1, %v27_v38  ;;  %v51_v59 = vmul.f32 %v221_v1, %v28_v43 }
   0xc   :  { %v116_v50 = vmax.f32 %v100_v40, 0.0  ;;  %130 = vst [vmem:[#allocation2 + $0x10] sm:$0xff] %v114_v45  ;;  %131 = vst [vmem:[#allocation2 + $0x18] sm:$0xff] %v115_v46  ;;  %v117_v57 = vmax.f32 %v101_v47, 0.0  ;;  %v72_v58 = vadd.f32 %v226_v2, %v49_v48  ;;  %v52_v60 = vmul.f32 %v221_v1, %v29_v44 }
   0xd   :  { %9 = vsyncpa [#allocation3], 0  ;;  %v118_v63 = vmax.f32 %v102_v51, 0.0  ;;  %v119_v0 = vmax.f32 %v103_v52, 0.0  ;;  %v73_v3 = vadd.f32 %v226_v2, %v50_v54  ;;  %v90_v4 = vld [vmem:[%s357_s1 + $0x50] sm:$0xff]  ;;  %v91_v5 = vld [vmem:[%s357_s1 + $0x58] sm:$0xff]  ;;  %v53_v6 = vmul.f32 %v221_v1, %v30_v49 }
   0xe   :  { %132 = vst [vmem:[#allocation2 + $0x20] sm:$0xff] %v116_v50  ;;  %133 = vst [vmem:[#allocation2 + $0x28] sm:$0xff] %v117_v57  ;;  %v104_v7 = vadd.f32 %v88_v53, %v72_v58  ;;  %v74_v8 = vadd.f32 %v226_v2, %v51_v59  ;;  %v75_v9 = vadd.f32 %v226_v2, %v52_v60  ;;  %v92_v10 = vld [vmem:[%s357_s1 + $0x60] sm:$0xff]  ;;  %v93_v14 = vld [vmem:[%s357_s1 + $0x68] sm:$0xff]  ;;  %s187_s2 = smov [#allocation2]  }
   0xf   :  { %v54_v11 = vmul.f32 %v221_v1, %v31_v56  ;;  %134 = vst [vmem:[#allocation2 + $0x30] sm:$0xff] %v118_v63  ;;  %135 = vst [vmem:[#allocation2 + $0x38] sm:$0xff] %v119_v0  ;;  %v105_v12 = vadd.f32 %v89_v55, %v73_v3  ;;  %v76_v13 = vadd.f32 %v226_v2, %v53_v6  ;;  %v94_v21 = vld [vmem:[%s357_s1 + $0x70] sm:$0xff]  ;;  %v95_v22 = vld [vmem:[%s357_s1 + $0x78] sm:$0xff]  ;;  %s149_s26 = sshll.u32 %s187_s2, 4  ;;  %s150_s26 = int_to_ptr.vmem [resolvable:$true] %s149_s26 }
  0x10   :  { %v55_v15 = vmul.f32 %v221_v1, %v32_v61  ;;  %v56_v16 = vmul.f32 %v221_v1, %v33_v62  ;;  %v120_v17 = vmax.f32 %v104_v7, 0.0  ;;  %v106_v18 = vadd.f32 %v90_v4, %v74_v8  ;;  %s165_s1 = scalar_lea.vmem %s150_s26, 2048  ;;  %p170_p1 = scmp.lt.s32.totalorder %s150_s26, %s150_s26 }
  0x11   :  { %v107_v19 = vadd.f32 %v91_v5, %v75_v9  ;;  %v77_v20 = vadd.f32 %v226_v2, %v54_v11  ;;  %v121_v23 = vmax.f32 %v105_v12, 0.0  ;;  %v108_v24 = vadd.f32 %v92_v10, %v76_v13  ;;  %p166_p0 = scmp.ne.s32.totalorder %s150_s26, %s165_s1  ;;  %p171_p2 = scmp.lt.s32.totalorder %s165_s1, %s165_s1 }
  0x12   :  { %v78_v25 = vadd.f32 %v226_v2, %v55_v15  ;;  %v79_v26 = vadd.f32 %v226_v2, %v56_v16  ;;  %136 = vst [vmem:[#allocation2 + $0x40] sm:$0xff] %v120_v17  ;;  %v122_v1 = vmax.f32 %v106_v18, 0.0 }
  0x13   :  { %v123_v27 = vmax.f32 %v107_v19, 0.0  ;;  %v109_v28 = vadd.f32 %v93_v14, %v77_v20  ;;  %137 = vst [vmem:[#allocation2 + $0x48] sm:$0xff] %v121_v23  ;;  %v124_v29 = vmax.f32 %v108_v24, 0.0  ;;  %p172_p3 = por %p171_p2, %p170_p1 }
  0x14   :  { %v110_v30 = vadd.f32 %v94_v21, %v78_v25  ;;  %v111_v31 = vadd.f32 %v95_v22, %v79_v26  ;;  %138 = vst [vmem:[#allocation2 + $0x50] sm:$0xff] %v122_v1 }
  0x15   :  { %139 = vst [vmem:[#allocation2 + $0x58] sm:$0xff] %v123_v27  ;;  %v125_v32 = vmax.f32 %v109_v28, 0.0  ;;  %140 = vst [vmem:[#allocation2 + $0x60] sm:$0xff] %v124_v29  ;;  %p173_p4 = pnand %p172_p3, %p166_p0 }
  0x16   :  { %v126_v33 = vmax.f32 %v110_v30, 0.0  ;;  %v127_v34 = vmax.f32 %v111_v31, 0.0 }
  0x17   :  { %141 = vst [vmem:[#allocation2 + $0x68] sm:$0xff] %v125_v32 }
  0x18   :  { %142 = vst [vmem:[#allocation2 + $0x70] sm:$0xff] %v126_v33  ;;  %143 = vst [vmem:[#allocation2 + $0x78] sm:$0xff] %v127_v34 }
  0x19   :  { %176 = shalt.err (!%p173_p4)
}
  0x1a   :  { %s188_s27 = smov 128   ;;  %s189_s3 = smov 8  }
  0x1b   :  { %155 = dma.vmem_to_hbm [thread:$0]  %s150_s26, 2048, %s360_s4, [#allocation3], %s188_s27, %s188_s27, %s189_s3  }
  0x1c   :  { %185 = dma.done.wait [#allocation3], 2048  }
  0x1d   :  { %186 = vsyncadd [#allocation3], 4294965248 }
  0x1e   :  { %159 = vsyncpa [#allocation3], 1 }

// kernel: _block_forward_jit.4
= control target key start
LH: loop header
LB: loop body
LE: loop exit
PB: predicated region body
PF: predicated region fallthrough
CT: control target
= control target key end

     0   :  { %vm248_vm0 = vcmask 1040384   ;;  %s562_s1 = inlined_call_operand.vmem [shape: f32[128,128], index: 1, kind: input, shape index: {}]   ;;  %s563_s0 = inlined_call_operand.vmem [shape: f32[128,128], index: 0, kind: input, shape index: {}]   ;;  %s564_s2 = inlined_call_operand.vmem [shape: f32[128,128], index: 2, kind: output, shape index: {0}]   ;;  %s565_s3 = inlined_call_operand.vmem [shape: f32[1,2,128], index: 3, kind: output, shape index: {1}]  }
   0x1   :  { %v44_v0 = vld [vmem:[%s562_s1 + $0x78] sm:$0xff]  ;;  %v43_v1 = vld [vmem:[%s562_s1 + $0x70] sm:$0xff]  ;;  %v42_v2 = vld [vmem:[%s562_s1 + $0x68] sm:$0xff] }
   0x2   :  { %307 = vmatprep.subr.mxu0 %v44_v0  ;;  %363 = vmatprep.subr.mxu1 %v44_v0  ;;  %v41_v3 = vld [vmem:[%s562_s1 + $0x60] sm:$0xff]  ;;  %v40_v4 = vld [vmem:[%s562_s1 + $0x58] sm:$0xff]  ;;  %v39_v5 = vld [vmem:[%s562_s1 + $0x50] sm:$0xff] }
   0x3   :  { %308 = vmatpush3.msra.mxu0 %v44_v0  ;;  %379 = vmatpush3.msra.mxu1 %v44_v0  ;;  %v38_v6 = vld [vmem:[%s562_s1 + $0x48] sm:$0xff]  ;;  %v37_v7 = vld [vmem:[%s562_s1 + $0x40] sm:$0xff]  ;;  %v36_v8 = vld [vmem:[%s562_s1 + $0x38] sm:$0xff] }
   0x4   :  { %309 = vmatprep.subr.mxu0 %v43_v1  ;;  %364 = vmatprep.subr.mxu1 %v43_v1  ;;  %v35_v9 = vld [vmem:[%s562_s1 + $0x30] sm:$0xff]  ;;  %v13_v10 = vld [vmem:[%s563_s0] sm:$0xff]  ;;  %v34_v11 = vld [vmem:[%s562_s1 + $0x28] sm:$0xff] }
   0x5   :  { %310 = vmatpush3.msra.mxu0 %v43_v1  ;;  %380 = vmatpush3.msra.mxu1 %v43_v1  ;;  %v33_v12 = vld [vmem:[%s562_s1 + $0x20] sm:$0xff]  ;;  %v32_v13 = vld [vmem:[%s562_s1 + $0x18] sm:$0xff]  ;;  %v31_v14 = vld [vmem:[%s562_s1 + $0x10] sm:$0xff] }
   0x6   :  { %311 = vmatprep.subr.mxu0 %v42_v2  ;;  %365 = vmatprep.subr.mxu1 %v42_v2  ;;  %v30_v15 = vld [vmem:[%s562_s1 + $0x8] sm:$0xff]  ;;  %v29_v16 = vld [vmem:[%s562_s1] sm:$0xff]  ;;  %v15_v18 = vld [vmem:[%s563_s0 + $0x10] sm:$0xff] }
   0x7   :  { %312 = vmatpush3.msra.mxu0 %v42_v2  ;;  %381 = vmatpush3.msra.mxu1 %v42_v2  ;;  %v14_v17 = vld [vmem:[%s563_s0 + $0x8] sm:$0xff]  ;;  %v21_v19 = vld [vmem:[%s563_s0 + $0x40] sm:$0xff]  ;;  %v23_v21 = vld [vmem:[%s563_s0 + $0x50] sm:$0xff] }
   0x8   :  { %313 = vmatprep.subr.mxu0 %v41_v3  ;;  %366 = vmatprep.subr.mxu1 %v41_v3  ;;  %v22_v20 = vld [vmem:[%s563_s0 + $0x48] sm:$0xff]  ;;  %v16_v22 = vld [vmem:[%s563_s0 + $0x18] sm:$0xff]  ;;  %v17_v23 = vld [vmem:[%s563_s0 + $0x20] sm:$0xff] }
   0x9   :  { %314 = vmatpush3.msra.mxu0 %v41_v3  ;;  %382 = vmatpush3.msra.mxu1 %v41_v3  ;;  %v24_v24 = vld [vmem:[%s563_s0 + $0x58] sm:$0xff]  ;;  %v25_v25 = vld [vmem:[%s563_s0 + $0x60] sm:$0xff]  ;;  %v18_v26 = vld [vmem:[%s563_s0 + $0x28] sm:$0xff] }
   0xa   :  { %315 = vmatprep.subr.mxu0 %v40_v4  ;;  %367 = vmatprep.subr.mxu1 %v40_v4  ;;  %v19_v27 = vld [vmem:[%s563_s0 + $0x30] sm:$0xff]  ;;  %v26_v28 = vld [vmem:[%s563_s0 + $0x68] sm:$0xff]  ;;  %v20_v30 = vld [vmem:[%s563_s0 + $0x38] sm:$0xff] }
   0xb   :  { %316 = vmatpush3.msra.mxu0 %v40_v4  ;;  %383 = vmatpush3.msra.mxu1 %v40_v4  ;;  %v27_v29 = vld [vmem:[%s563_s0 + $0x70] sm:$0xff]  ;;  %v28_v31 = vld [vmem:[%s563_s0 + $0x78] sm:$0xff] }
   0xc   :  { %317 = vmatprep.subr.mxu0 %v39_v5  ;;  %368 = vmatprep.subr.mxu1 %v39_v5 }
   0xd   :  { %318 = vmatpush3.msra.mxu0 %v39_v5  ;;  %384 = vmatpush3.msra.mxu1 %v39_v5 }
   0xe   :  { %319 = vmatprep.subr.mxu0 %v38_v6  ;;  %369 = vmatprep.subr.mxu1 %v38_v6 }
   0xf   :  { %320 = vmatpush3.msra.mxu0 %v38_v6  ;;  %385 = vmatpush3.msra.mxu1 %v38_v6 }
  0x10   :  { %321 = vmatprep.subr.mxu0 %v37_v7  ;;  %370 = vmatprep.subr.mxu1 %v37_v7 }
  0x11   :  { %322 = vmatpush3.msra.mxu0 %v37_v7  ;;  %386 = vmatpush3.msra.mxu1 %v37_v7 }
  0x12   :  { %323 = vmatprep.subr.mxu0 %v36_v8  ;;  %371 = vmatprep.subr.mxu1 %v36_v8 }
  0x13   :  { %324 = vmatpush3.msra.mxu0 %v36_v8  ;;  %387 = vmatpush3.msra.mxu1 %v36_v8 }
  0x14   :  { %325 = vmatprep.subr.mxu0 %v35_v9  ;;  %339 = vmatprep.mubr.f32.mxu0 %v13_v10 }
  0x15   :  { %326 = vmatpush3.msra.mxu0 %v35_v9  ;;  %372 = vmatprep.subr.mxu1 %v35_v9 }
  0x16   :  { %327 = vmatprep.subr.mxu0 %v34_v11  ;;  %388 = vmatpush3.msra.mxu1 %v35_v9 }
  0x17   :  { %328 = vmatpush3.msra.mxu0 %v34_v11  ;;  %373 = vmatprep.subr.mxu1 %v34_v11 }
  0x18   :  { %329 = vmatprep.subr.mxu0 %v33_v12  ;;  %389 = vmatpush3.msra.mxu1 %v34_v11 }
  0x19   :  { %330 = vmatpush3.msra.mxu0 %v33_v12  ;;  %374 = vmatprep.subr.mxu1 %v33_v12 }
  0x1a   :  { %331 = vmatprep.subr.mxu0 %v32_v13  ;;  %390 = vmatpush3.msra.mxu1 %v33_v12 }
  0x1b   :  { %332 = vmatpush3.msra.mxu0 %v32_v13  ;;  %375 = vmatprep.subr.mxu1 %v32_v13 }
  0x1c   :  { %333 = vmatprep.subr.mxu0 %v31_v14  ;;  %391 = vmatpush3.msra.mxu1 %v32_v13 }
  0x1d   :  { %334 = vmatpush3.msra.mxu0 %v31_v14  ;;  %376 = vmatprep.subr.mxu1 %v31_v14 }
  0x1e   :  { %335 = vmatprep.subr.mxu0 %v30_v15  ;;  %392 = vmatpush3.msra.mxu1 %v31_v14 }
  0x1f   :  { %336 = vmatpush3.msra.mxu0 %v30_v15  ;;  %377 = vmatprep.subr.mxu1 %v30_v15 }
  0x20   :  { %337 = vmatprep.subr.mxu0 %v29_v16  ;;  %393 = vmatpush3.msra.mxu1 %v30_v15 }
  0x21   :  { %338 = vmatpush3.msra.mxu0 %v29_v16  ;;  %378 = vmatprep.subr.mxu1 %v29_v16 }
  0x22   :  { %340 = vmatmul.mubr.f32.vlgmr.msra.gmra.mxu0 %v14_v17  ;;  %394 = vmatpush3.msra.mxu1 %v29_v16 }
  0x23   :  { %342 = vmatprep.mubr.f32.mxu0 %v15_v18  ;;  %351 = vmatprep.mubr.f32.mxu1 %v21_v19 }
  0x24   :  { %352 = vmatmul.mubr.f32.vlgmr.msra.gmra.mxu1 %v22_v20 }
  0x25   :  { %354 = vmatprep.mubr.f32.mxu1 %v23_v21 }
  0x26   :  { %343 = vmatmul.mubr.f32.gmra.mxu0 %v16_v22 }
  0x27   :  { %345 = vmatprep.mubr.f32.mxu0 %v17_v23 }
  0x28   :  { %355 = vmatmul.mubr.f32.gmra.mxu1 %v24_v24 }
  0x29   :  { %357 = vmatprep.mubr.f32.mxu1 %v25_v25 }
  0x2a   :  { %346 = vmatmul.mubr.f32.gmra.mxu0 %v18_v26 }
  0x2b   :  { %348 = vmatprep.mubr.f32.mxu0 %v19_v27 }
  0x2c   :  { %358 = vmatmul.mubr.f32.gmra.mxu1 %v26_v28 }
  0x2d   :  { %360 = vmatprep.mubr.f32.mxu1 %v27_v29 }
  0x2e   :  { %349 = vmatmul.mubr.f32.gmra.mxu0 %v20_v30 }
  0x30   :  { %361 = vmatmul.mubr.f32.gmra.mxu1 %v28_v31 }
  0xe2   :  { %v341_v32 = vpop.f32.mrf.mxu0 }
  0xe3   :  { %252 = vst [vmem:[%s564_s2 + $0x8] sm:$0xff] %v341_v32  ;;  %v212_v38 = vmul.f32 %v341_v32, %v341_v32 }
  0xe4   :  { %v111_v33 = vpop.f32.mrf.mxu0  ;;  %v353_v34 = vpop.f32.mrf.mxu1 }
  0xe5   :  { %v211_v35 = vmul.f32 %v111_v33, %v111_v33  ;;  %251 = vst [vmem:[%s564_s2] sm:$0xff] %v111_v33  ;;  %260 = vst [vmem:[%s564_s2 + $0x48] sm:$0xff] %v353_v34  ;;  %v190_v39 = vadd.f32 %v341_v32, %v111_v33  ;;  %v220_v8 = vmul.f32 %v353_v34, %v353_v34 }
  0xe6   :  { %v344_v36 = vpop.f32.mrf.mxu0  ;;  %v151_v37 = vpop.f32.mrf.mxu1 }
  0xe7   :  { %254 = vst [vmem:[%s564_s2 + $0x18] sm:$0xff] %v344_v36  ;;  %259 = vst [vmem:[%s564_s2 + $0x40] sm:$0xff] %v151_v37  ;;  %v227_v42 = vadd.f32 %v212_v38, %v211_v35  ;;  %v214_v47 = vmul.f32 %v344_v36, %v344_v36  ;;  %v219_v7 = vmul.f32 %v151_v37, %v151_v37 }
  0xe8   :  { %v121_v40 = vpop.f32.mrf.mxu0  ;;  %v356_v41 = vpop.f32.mrf.mxu1 }
  0xe9   :  { %v191_v43 = vadd.f32 %v190_v39, %v121_v40  ;;  %v213_v44 = vmul.f32 %v121_v40, %v121_v40  ;;  %253 = vst [vmem:[%s564_s2 + $0x10] sm:$0xff] %v121_v40  ;;  %262 = vst [vmem:[%s564_s2 + $0x58] sm:$0xff] %v356_v41  ;;  %v222_v14 = vmul.f32 %v356_v41, %v356_v41 }
  0xea   :  { %v347_v45 = vpop.f32.mrf.mxu0  ;;  %v161_v46 = vpop.f32.mrf.mxu1 }
  0xeb   :  { %v228_v48 = vadd.f32 %v227_v42, %v213_v44  ;;  %256 = vst [vmem:[%s564_s2 + $0x28] sm:$0xff] %v347_v45  ;;  %v192_v49 = vadd.f32 %v344_v36, %v191_v43  ;;  %261 = vst [vmem:[%s564_s2 + $0x50] sm:$0xff] %v161_v46  ;;  %v216_v57 = vmul.f32 %v347_v45, %v347_v45 }
  0xec   :  { %v131_v50 = vpop.f32.mrf.mxu0  ;;  %v359_v51 = vpop.f32.mrf.mxu1  ;;  %v221_v12 = vmul.f32 %v161_v46, %v161_v46 }
  0xed   :  { %v193_v52 = vadd.f32 %v192_v49, %v131_v50  ;;  %v215_v53 = vmul.f32 %v131_v50, %v131_v50  ;;  %v229_v54 = vadd.f32 %v228_v48, %v214_v47  ;;  %255 = vst [vmem:[%s564_s2 + $0x20] sm:$0xff] %v131_v50  ;;  %264 = vst [vmem:[%s564_s2 + $0x68] sm:$0xff] %v359_v51 }
  0xee   :  { %v350_v55 = vpop.f32.mrf.mxu0  ;;  %v171_v56 = vpop.f32.mrf.mxu1  ;;  %v224_v20 = vmul.f32 %v359_v51, %v359_v51 }
  0xef   :  { %v230_v58 = vadd.f32 %v229_v54, %v215_v53  ;;  %258 = vst [vmem:[%s564_s2 + $0x38] sm:$0xff] %v350_v55  ;;  %v194_v59 = vadd.f32 %v347_v45, %v193_v52  ;;  %263 = vst [vmem:[%s564_s2 + $0x60] sm:$0xff] %v171_v56  ;;  %v218_v2 = vmul.f32 %v350_v55, %v350_v55 }
  0xf0   :  { %v141_v60 = vpop.f32.mrf.mxu0  ;;  %v362_v61 = vpop.f32.mrf.mxu1  ;;  %v223_v18 = vmul.f32 %v171_v56, %v171_v56 }
  0xf1   :  { %v195_v62 = vadd.f32 %v194_v59, %v141_v60  ;;  %v217_v63 = vmul.f32 %v141_v60, %v141_v60  ;;  %v231_v0 = vadd.f32 %v230_v58, %v216_v57  ;;  %257 = vst [vmem:[%s564_s2 + $0x30] sm:$0xff] %v141_v60  ;;  %266 = vst [vmem:[%s564_s2 + $0x78] sm:$0xff] %v362_v61 }
  0xf2   :  { %v181_v1 = vpop.f32.mrf.mxu1  ;;  %v226_v26 = vmul.f32 %v362_v61, %v362_v61 }
  0xf3   :  { %v196_v3 = vadd.f32 %v350_v55, %v195_v62  ;;  %v232_v4 = vadd.f32 %v231_v0, %v217_v63  ;;  %265 = vst [vmem:[%s564_s2 + $0x70] sm:$0xff] %v181_v1  ;;  %v225_v24 = vmul.f32 %v181_v1, %v181_v1 }
  0xf5   :  { %v233_v5 = vadd.f32 %v232_v4, %v218_v2  ;;  %v197_v6 = vadd.f32 %v196_v3, %v151_v37 }
  0xf7   :  { %v234_v9 = vadd.f32 %v233_v5, %v219_v7  ;;  %v198_v10 = vadd.f32 %v353_v34, %v197_v6 }
  0xf9   :  { %v199_v11 = vadd.f32 %v198_v10, %v161_v46  ;;  %v235_v13 = vadd.f32 %v234_v9, %v220_v8 }
  0xfb   :  { %v236_v15 = vadd.f32 %v235_v13, %v221_v12  ;;  %v200_v16 = vadd.f32 %v356_v41, %v199_v11 }
  0xfd   :  { %v201_v17 = vadd.f32 %v200_v16, %v171_v56  ;;  %v237_v19 = vadd.f32 %v236_v15, %v222_v14 }
  0xff   :  { %v238_v21 = vadd.f32 %v237_v19, %v223_v18  ;;  %v202_v22 = vadd.f32 %v359_v51, %v201_v17 }
 0x101   :  { %v203_v23 = vadd.f32 %v202_v22, %v181_v1  ;;  %v239_v25 = vadd.f32 %v238_v21, %v224_v20 }
 0x103   :  { %v204_v27 = vadd.f32 %v362_v61, %v203_v23  ;;  %v240_v28 = vadd.f32 %v239_v25, %v225_v24 }
 0x105   :  { %v205_v29 = vrot.slane %v204_v27, 4  ;;  %v241_v30 = vadd.f32 %v240_v28, %v226_v26 }
 0x107   :  { %v206_v31 = vadd.f32 %v205_v29, %v204_v27  ;;  %v242_v32 = vrot.slane %v241_v30, 4 }
 0x109   :  { %v207_v33 = vrot.slane %v206_v31, 2  ;;  %v243_v34 = vadd.f32 %v242_v32, %v241_v30 }
 0x10b   :  { %v208_v35 = vadd.f32 %v207_v33, %v206_v31  ;;  %v244_v36 = vrot.slane %v243_v34, 2 }
 0x10d   :  { %v209_v37 = vrot.slane %v208_v35, 1  ;;  %v245_v38 = vadd.f32 %v244_v36, %v243_v34 }
 0x10f   :  { %v246_v39 = vrot.slane %v245_v38, 1  ;;  %v210_v40 = vadd.f32 %v209_v37, %v208_v35 }
 0x111   :  { %v247_v41 = vadd.f32 %v246_v39, %v245_v38 }
 0x113   :  { %v249_v42 = vsel %vm248_vm0, %v210_v40, %v247_v41 }
 0x114   :  { %250 = vst [vmem:[%s565_s3] sm:$0x3] %v249_v42 }

// kernel: _block_forward_jit.5
= control target key start
LH: loop header
LB: loop body
LE: loop exit
PB: predicated region body
PF: predicated region fallthrough
CT: control target
= control target key end

     0   :  { %s2501_s18 = smov 0   ;;  %s3151_s0 = inlined_call_operand.vmem [shape: f32[2,8,8,128], index: 0, kind: input, shape index: {}]   ;;  %s3152_s1 = inlined_call_operand.vmem [shape: f32[1,128], index: 1, kind: input, shape index: {}]   ;;  %s3153_s2 = inlined_call_operand.vmem [shape: f32[1,128], index: 2, kind: input, shape index: {}]   ;;  %s3154_s3 = inlined_call_operand.vmem [shape: f32[3,3,128,128], index: 3, kind: input, shape index: {}]   ;;  %s3155_s4 = inlined_call_operand.vmem [shape: f32[2,8,8,128], index: 4, kind: output, shape index: {0}]   ;;  %s3156_s5 = inlined_call_operand.vmem [shape: f32[2,2,128], index: 5, kind: output, shape index: {1}]  }
   0x1 LB: > { %s1665_s19 = sadd.s32 4294967295, %s2468_s18   ;;  %p1669_p0 = scmp.ge.s32.totalorder %s2468_s18, 1  ;;  %s2468_s18 = sphi %s2501_s18, %s16_s18  }
   0x2   : > { %p190_p1 = scmp.lt.s32.totalorder %s2468_s18, 3 }
   0x4   : > { %p191_p2 = pnand %p1669_p0, %p190_p1 }
   0x6   : > { %194 = sbr.rel (%p191_p2) target bundleno = 434 (0x1b2), region = 36 }
   0xb   : > { %v1692_v0 = vld [vmem:[%s3154_s3 + $0xf8] sm:$0xff]  ;;  %v1691_v2 = vld [vmem:[%s3154_s3 + $0xf0] sm:$0xff]  ;;  %p2520_p3 = scmp.lt.s32.totalorder %s1665_s19, 1  ;;  %v2470_v4 = vmov 0.0   ;;  %v1690_v5 = vld [vmem:[%s3154_s3 + $0xe8] sm:$0xff]  ;;  %vm1568_vm0 = vcmask 1040384  }
   0xc   : > { %v331_v1 = vld [vmem:[%s3154_s3 + $0x78] sm:$0xff]  ;;  %2025 = vmatprep.subr.mxu0 %v1692_v0  ;;  %v330_v3 = vld [vmem:[%s3154_s3 + $0x70] sm:$0xff]  ;;  %236 = vst [vmem:[#allocation2] sm:$0xff] %v2470_v4  ;;  %237 = vst [vmem:[#allocation2 + $0x8] sm:$0x3] %v2470_v4 }
   0xd   : > { %2069 = vmatprep.subr.mxu1 %v331_v1  ;;  %239 = vst [vmem:[#allocation2 + $0x90] sm:$0xff] %v2470_v4  ;;  %240 = vst [vmem:[#allocation2 + $0x98] sm:$0x3] %v2470_v4  ;;  %2026 = vmatpush3.msra.mxu0 %v1692_v0  ;;  %v329_v6 = vld [vmem:[%s3154_s3 + $0x68] sm:$0xff]  ;;  %s3167_s19 = smov (!%p2520_p3, %s1665_s19), 1  ;;  %v1689_v7 = vld [vmem:[%s3154_s3 + $0xe0] sm:$0xff] }
   0xe   : > { %242 = vst [vmem:[#allocation2 + $0x10] sm:$0x1] %v2470_v4  ;;  %243 = vst [vmem:[#allocation2 + $0x20] sm:$0x1] %v2470_v4  ;;  %2070 = vmatpush3.msra.mxu1 %v331_v1  ;;  %2027 = vmatprep.subr.mxu0 %v1691_v2  ;;  %v328_v8 = vld [vmem:[%s3154_s3 + $0x60] sm:$0xff]  ;;  %s1807_s12 = sshll.u32 %s3167_s19, 6 }
   0xf   : > { %244 = vst [vmem:[#allocation2 + $0x30] sm:$0x1] %v2470_v4  ;;  %245 = vst [vmem:[#allocation2 + $0x40] sm:$0x1] %v2470_v4  ;;  %2071 = vmatprep.subr.mxu1 %v330_v3  ;;  %2028 = vmatpush3.msra.mxu0 %v1691_v2  ;;  %v1688_v9 = vld [vmem:[%s3154_s3 + $0xd8] sm:$0xff]  ;;  %v1687_v11 = vld [vmem:[%s3154_s3 + $0xd0] sm:$0xff]  ;;  %s2563_s25 = scalar_lea.vmem %s3151_s0, %s1807_s12  ;;  %s3132_s9 = scalar_lea.vmem %s3155_s4, %s1807_s12 }
  0x10   : > { %246 = vst [vmem:[#allocation2 + $0x50] sm:$0x1] %v2470_v4  ;;  %247 = vst [vmem:[#allocation2 + $0x60] sm:$0x1] %v2470_v4  ;;  %2072 = vmatpush3.msra.mxu1 %v330_v3  ;;  %2029 = vmatprep.subr.mxu0 %v1690_v5  ;;  %v327_v10 = vld [vmem:[%s3154_s3 + $0x58] sm:$0xff]  ;;  %v326_v12 = vld [vmem:[%s3154_s3 + $0x50] sm:$0xff] }
  0x11   : > { %248 = vst [vmem:[#allocation2 + $0x70] sm:$0x1] %v2470_v4  ;;  %249 = vst [vmem:[#allocation2 + $0x80] sm:$0x1] %v2470_v4  ;;  %2073 = vmatprep.subr.mxu1 %v329_v6  ;;  %2030 = vmatpush3.msra.mxu0 %v1690_v5  ;;  %v1686_v13 = vld [vmem:[%s3154_s3 + $0xc8] sm:$0xff]  ;;  %v261_v15 = vld [vmem:[%s2563_s25] sm:$0xff] }
  0x12   : > { %252 = vst [vmem:[#allocation2 + $0x19] sm:$0x1] %v2470_v4  ;;  %253 = vst [vmem:[#allocation2 + $0x29] sm:$0x1] %v2470_v4  ;;  %2074 = vmatpush3.msra.mxu1 %v329_v6  ;;  %2031 = vmatprep.subr.mxu0 %v1689_v7  ;;  %v325_v14 = vld [vmem:[%s3154_s3 + $0x48] sm:$0xff]  ;;  %v1685_v17 = vld [vmem:[%s3154_s3 + $0xc0] sm:$0xff] }
  0x13   : > { %254 = vst [vmem:[#allocation2 + $0x39] sm:$0x1] %v2470_v4  ;;  %255 = vst [vmem:[#allocation2 + $0x49] sm:$0x1] %v2470_v4  ;;  %2075 = vmatprep.subr.mxu1 %v328_v8  ;;  %2032 = vmatpush3.msra.mxu0 %v1689_v7  ;;  %v2575_v16 = vld [vmem:[%s3152_s1] ss:$0 sm:$0xff] }
  0x14   : > { %256 = vst [vmem:[#allocation2 + $0x59] sm:$0x1] %v2470_v4  ;;  %257 = vst [vmem:[#allocation2 + $0x69] sm:$0x1] %v2470_v4  ;;  %2076 = vmatpush3.msra.mxu1 %v328_v8  ;;  %2033 = vmatprep.subr.mxu0 %v1688_v9  ;;  %v324_v18 = vld [vmem:[%s3154_s3 + $0x40] sm:$0xff]  ;;  %v276_v19 = vmul.f32 %v2575_v16, %v261_v15  ;;  %v1684_v21 = vld [vmem:[%s3154_s3 + $0xb8] sm:$0xff] }
  0x15   : > { %258 = vst [vmem:[#allocation2 + $0x79] sm:$0x1] %v2470_v4  ;;  %259 = vst [vmem:[#allocation2 + $0x89] sm:$0x1] %v2470_v4  ;;  %2077 = vmatprep.subr.mxu1 %v327_v10  ;;  %2034 = vmatpush3.msra.mxu0 %v1688_v9  ;;  %v2587_v20 = vld [vmem:[%s3153_s2] ss:$0 sm:$0xff] }
  0x16   : > { %241 = vst [vmem:[#allocation2] sm:$0x1] %v2470_v4  ;;  %251 = vst [vmem:[#allocation2 + $0x9] sm:$0x1] %v2470_v4  ;;  %2078 = vmatpush3.msra.mxu1 %v327_v10  ;;  %2035 = vmatprep.subr.mxu0 %v1687_v11  ;;  %v323_v22 = vld [vmem:[%s3154_s3 + $0x38] sm:$0xff]  ;;  %v2596_v23 = vadd.f32 %v2587_v20, %v276_v19  ;;  %v1683_v24 = vld [vmem:[%s3154_s3 + $0xb0] sm:$0xff] }
  0x17   : > { %250 = vst [vmem:[#allocation2 + $0x90] sm:$0x1] %v2470_v4  ;;  %260 = vst [vmem:[#allocation2 + $0x99] sm:$0x1] %v2470_v4  ;;  %2079 = vmatprep.subr.mxu1 %v326_v12  ;;  %2036 = vmatpush3.msra.mxu0 %v1687_v11  ;;  %v322_v25 = vld [vmem:[%s3154_s3 + $0x30] sm:$0xff]  ;;  %v1682_v26 = vld [vmem:[%s3154_s3 + $0xa8] sm:$0xff] }
  0x18   : > { %2080 = vmatpush3.msra.mxu1 %v326_v12  ;;  %2037 = vmatprep.subr.mxu0 %v1686_v13  ;;  %300 = vst [vmem:[#allocation2 + $0x11] sm:$0xff] %v2596_v23  ;;  %v321_v27 = vld [vmem:[%s3154_s3 + $0x28] sm:$0xff]  ;;  %v263_v30 = vld [vmem:[%s2563_s25 + $0x10] sm:$0xff]  ;;  %v1681_v31 = vld [vmem:[%s3154_s3 + $0xa0] sm:$0xff]  ;;  %s1674_s12 = sshll.u32 %s3167_s19, 1 }
  0x19   : > { %2081 = vmatprep.subr.mxu1 %v325_v14  ;;  %2038 = vmatpush3.msra.mxu0 %v1686_v13  ;;  %v262_v28 = vld [vmem:[%s2563_s25 + $0x8] sm:$0xff]  ;;  %v320_v32 = vld [vmem:[%s3154_s3 + $0x20] sm:$0xff]  ;;  %v278_v33 = vmul.f32 %v2575_v16, %v263_v30  ;;  %v264_v34 = vld [vmem:[%s2563_s25 + $0x18] sm:$0xff]  ;;  %s235_s11 = scalar_lea.vmem %s3156_s5, %s1674_s12 }
  0x1a   : > { %2082 = vmatpush3.msra.mxu1 %v325_v14  ;;  %2039 = vmatprep.subr.mxu0 %v1685_v17  ;;  %v277_v29 = vmul.f32 %v2575_v16, %v262_v28  ;;  %v279_v36 = vmul.f32 %v2575_v16, %v264_v34  ;;  %v265_v37 = vld [vmem:[%s2563_s25 + $0x20] sm:$0xff]  ;;  %v1680_v38 = vld [vmem:[%s3154_s3 + $0x98] sm:$0xff]  ;;  %v266_v42 = vld [vmem:[%s2563_s25 + $0x28] sm:$0xff] }
  0x1b   : > { %2083 = vmatprep.subr.mxu1 %v324_v18  ;;  %2040 = vmatpush3.msra.mxu0 %v1685_v17  ;;  %v319_v39 = vld [vmem:[%s3154_s3 + $0x18] sm:$0xff]  ;;  %v2634_v40 = vadd.f32 %v2587_v20, %v278_v33  ;;  %v280_v41 = vmul.f32 %v2575_v16, %v265_v37  ;;  %v281_v44 = vmul.f32 %v2575_v16, %v266_v42  ;;  %v267_v45 = vld [vmem:[%s2563_s25 + $0x30] sm:$0xff]  ;;  %v1678_v51 = vld [vmem:[%s3154_s3 + $0x88] sm:$0xff] }
  0x1c   : > { %2084 = vmatpush3.msra.mxu1 %v324_v18  ;;  %2041 = vmatprep.subr.mxu0 %v1684_v21  ;;  %v2623_v35 = vadd.f32 %v2587_v20, %v277_v29  ;;  %v2640_v43 = vadd.f32 %v2587_v20, %v279_v36  ;;  %v1679_v46 = vld [vmem:[%s3154_s3 + $0x90] sm:$0xff]  ;;  %v282_v49 = vmul.f32 %v2575_v16, %v267_v45  ;;  %v317_v52 = vld [vmem:[%s3154_s3 + $0x8] sm:$0xff]  ;;  %v1677_v54 = vld [vmem:[%s3154_s3 + $0x80] sm:$0xff] }
  0x1d   : > { %2085 = vmatprep.subr.mxu1 %v323_v22  ;;  %2042 = vmatpush3.msra.mxu0 %v1684_v21  ;;  %v318_v47 = vld [vmem:[%s3154_s3 + $0x10] sm:$0xff]  ;;  %302 = vst [vmem:[#allocation2 + $0x31] sm:$0xff] %v2634_v40  ;;  %v2652_v48 = vadd.f32 %v2587_v20, %v280_v41  ;;  %v2657_v50 = vadd.f32 %v2587_v20, %v281_v44  ;;  %v316_v55 = vld [vmem:[%s3154_s3] sm:$0xff]  ;;  %v1708_v59 = vld [vmem:[%s3154_s3 + $0x178] sm:$0xff] }
  0x1e   : > { %2086 = vmatpush3.msra.mxu1 %v323_v22  ;;  %2043 = vmatprep.subr.mxu0 %v1683_v24  ;;  %301 = vst [vmem:[#allocation2 + $0x21] sm:$0xff] %v2623_v35  ;;  %303 = vst [vmem:[#allocation2 + $0x41] sm:$0xff] %v2640_v43  ;;  %v2667_v53 = vadd.f32 %v2587_v20, %v282_v49  ;;  %v332_v56 = vld [vmem:[#allocation2 + $0x1] sm:$0xff]  ;;  %v1724_v60 = vld [vmem:[%s3154_s3 + $0x1f8] sm:$0xff] }
  0x1f   : > { %2087 = vmatprep.subr.mxu1 %v322_v25  ;;  %2044 = vmatpush3.msra.mxu0 %v1683_v24  ;;  %304 = vst [vmem:[#allocation2 + $0x51] sm:$0xff] %v2652_v48  ;;  %305 = vst [vmem:[#allocation2 + $0x61] sm:$0xff] %v2657_v50  ;;  %v308_v57 = vld [vmem:[#allocation2] sm:$0xff]  ;;  %v2677_v58 = vld [vmem:[#allocation2 + $0x10] sm:$0xff] }
  0x20   : > { %2088 = vmatpush3.msra.mxu1 %v322_v25  ;;  %2045 = vmatprep.subr.mxu0 %v1682_v26  ;;  %306 = vst [vmem:[#allocation2 + $0x71] sm:$0xff] %v2667_v53  ;;  %v268_v61 = vld [vmem:[%s2563_s25 + $0x38] sm:$0xff]  ;;  %v1707_v63 = vld [vmem:[%s3154_s3 + $0x170] sm:$0xff]  ;;  %v1706_v2 = vld [vmem:[%s3154_s3 + $0x168] sm:$0xff] }
  0x21   : > { %2089 = vmatprep.subr.mxu1 %v321_v27  ;;  %2046 = vmatpush3.msra.mxu0 %v1682_v26  ;;  %v283_v62 = vmul.f32 %v2575_v16, %v268_v61  ;;  %v1723_v0 = vld [vmem:[%s3154_s3 + $0x1f0] sm:$0xff]  ;;  %v1722_v3 = vld [vmem:[%s3154_s3 + $0x1e8] sm:$0xff]  ;;  %v1705_v4 = vld [vmem:[%s3154_s3 + $0x160] sm:$0xff] }
  0x22   : > { %2090 = vmatpush3.msra.mxu1 %v321_v27  ;;  %2047 = vmatprep.subr.mxu0 %v1681_v31  ;;  %v1721_v5 = vld [vmem:[%s3154_s3 + $0x1e0] sm:$0xff]  ;;  %v1704_v6 = vld [vmem:[%s3154_s3 + $0x158] sm:$0xff]  ;;  %v1703_v8 = vld [vmem:[%s3154_s3 + $0x150] sm:$0xff] }
  0x23   : > { %2091 = vmatprep.subr.mxu1 %v320_v32  ;;  %2048 = vmatpush3.msra.mxu0 %v1681_v31  ;;  %v2696_v1 = vadd.f32 %v2587_v20, %v283_v62  ;;  %v1720_v7 = vld [vmem:[%s3154_s3 + $0x1d8] sm:$0xff]  ;;  %v1719_v9 = vld [vmem:[%s3154_s3 + $0x1d0] sm:$0xff]  ;;  %v1702_v10 = vld [vmem:[%s3154_s3 + $0x148] sm:$0xff] }
  0x24   : > { %2092 = vmatpush3.msra.mxu1 %v320_v32  ;;  %2049 = vmatprep.subr.mxu0 %v1680_v38  ;;  %v1718_v11 = vld [vmem:[%s3154_s3 + $0x1c8] sm:$0xff]  ;;  %v1701_v12 = vld [vmem:[%s3154_s3 + $0x140] sm:$0xff]  ;;  %v1700_v14 = vld [vmem:[%s3154_s3 + $0x138] sm:$0xff] }
  0x25   : > { %2093 = vmatprep.subr.mxu1 %v319_v39  ;;  %2050 = vmatpush3.msra.mxu0 %v1680_v38  ;;  %307 = vst [vmem:[#allocation2 + $0x81] sm:$0xff] %v2696_v1  ;;  %v1717_v13 = vld [vmem:[%s3154_s3 + $0x1c0] sm:$0xff]  ;;  %v1716_v15 = vld [vmem:[%s3154_s3 + $0x1b8] sm:$0xff]  ;;  %v1699_v17 = vld [vmem:[%s3154_s3 + $0x130] sm:$0xff] }
  0x26   : > { %2094 = vmatpush3.msra.mxu1 %v319_v39  ;;  %2051 = vmatprep.subr.mxu0 %v1679_v46  ;;  %v2741_v16 = vld [vmem:[#allocation2 + $0x20] sm:$0xff]  ;;  %v1715_v18 = vld [vmem:[%s3154_s3 + $0x1b0] sm:$0xff]  ;;  %v1698_v20 = vld [vmem:[%s3154_s3 + $0x128] sm:$0xff] }
  0x27   : > { %2095 = vmatprep.subr.mxu1 %v318_v47  ;;  %2052 = vmatpush3.msra.mxu0 %v1679_v46  ;;  %v2749_v19 = vld [vmem:[#allocation2 + $0x30] sm:$0xff]  ;;  %v1714_v21 = vld [vmem:[%s3154_s3 + $0x1a8] sm:$0xff]  ;;  %v2761_v22 = vld [vmem:[#allocation2 + $0x40] sm:$0xff] }
  0x28   : > { %2096 = vmatpush3.msra.mxu1 %v318_v47  ;;  %2053 = vmatprep.subr.mxu0 %v1678_v51  ;;  %v1697_v24 = vld [vmem:[%s3154_s3 + $0x120] sm:$0xff]  ;;  %v2769_v26 = vld [vmem:[#allocation2 + $0x50] sm:$0xff]  ;;  %v1696_v27 = vld [vmem:[%s3154_s3 + $0x118] sm:$0xff] }
  0x29   : > { %2097 = vmatprep.subr.mxu1 %v317_v52  ;;  %2054 = vmatpush3.msra.mxu0 %v1678_v51  ;;  %v1713_v25 = vld [vmem:[%s3154_s3 + $0x1a0] sm:$0xff]  ;;  %v1712_v28 = vld [vmem:[%s3154_s3 + $0x198] sm:$0xff]  ;;  %v1695_v30 = vld [vmem:[%s3154_s3 + $0x110] sm:$0xff] }
  0x2a   : > { %2098 = vmatpush3.msra.mxu1 %v317_v52  ;;  %2055 = vmatprep.subr.mxu0 %v1677_v54  ;;  %v2781_v29 = vld [vmem:[#allocation2 + $0x60] sm:$0xff]  ;;  %v1711_v31 = vld [vmem:[%s3154_s3 + $0x190] sm:$0xff]  ;;  %v1694_v33 = vld [vmem:[%s3154_s3 + $0x108] sm:$0xff] }
  0x2b   : > { %2099 = vmatprep.subr.mxu1 %v316_v55  ;;  %2056 = vmatpush3.msra.mxu0 %v1677_v54  ;;  %v2789_v32 = vld [vmem:[#allocation2 + $0x70] sm:$0xff]  ;;  %v1710_v34 = vld [vmem:[%s3154_s3 + $0x188] sm:$0xff]  ;;  %v1693_v36 = vld [vmem:[%s3154_s3 + $0x100] sm:$0xff] }
  0x2c   : > { %2057 = vmatprep.mubr.f32.mxu0 %v332_v56  ;;  %2100 = vmatpush3.msra.mxu1 %v316_v55  ;;  %v1709_v37 = vld [vmem:[%s3154_s3 + $0x180] sm:$0xff]  ;;  %v2807_v39 = vld [vmem:[#allocation2 + $0x12] sm:$0xff]  ;;  %v1738_v49 = vld [vmem:[%s3154_s3 + $0x268] sm:$0xff] }
  0x2d   : > { %2101 = vmatprep.mubr.f32.mxu1 %v308_v57  ;;  %2058 = vmatmul.mubr.f32.vlgmr.msra.gmra.mxu0 %v2596_v23  ;;  %v567_v38 = vld [vmem:[#allocation2 + $0x2] sm:$0xff]  ;;  %v1740_v41 = vld [vmem:[%s3154_s3 + $0x278] sm:$0xff]  ;;  %v1739_v44 = vld [vmem:[%s3154_s3 + $0x270] sm:$0xff] }
  0x2e   : > { %2102 = vmatmul.mubr.f32.vlgmr.msra.gmra.mxu1 %v2677_v58  ;;  %2113 = vmatprep.subr.mxu0 %v1708_v59  ;;  %v1756_v42 = vld [vmem:[%s3154_s3 + $0x2f8] sm:$0xff]  ;;  %v1755_v45 = vld [vmem:[%s3154_s3 + $0x2f0] sm:$0xff]  ;;  %v2824_v46 = vld [vmem:[#allocation2 + $0x22] sm:$0xff] }
  0x2f   : > { %2157 = vmatprep.subr.mxu1 %v1724_v60  ;;  %2114 = vmatpush3.msra.mxu0 %v1708_v59  ;;  %v2826_v47 = vld [vmem:[#allocation2 + $0x32] sm:$0xff]  ;;  %v1754_v51 = vld [vmem:[%s3154_s3 + $0x2e8] sm:$0xff]  ;;  %v1737_v52 = vld [vmem:[%s3154_s3 + $0x260] sm:$0xff] }
  0x30   : > { %2158 = vmatpush3.msra.mxu1 %v1724_v60  ;;  %2115 = vmatprep.subr.mxu0 %v1707_v63  ;;  %v1753_v54 = vld [vmem:[%s3154_s3 + $0x2e0] sm:$0xff]  ;;  %v2845_v56 = vld [vmem:[#allocation2 + $0x52] sm:$0xff] }
  0x31   : > { %2159 = vmatprep.subr.mxu1 %v1723_v0  ;;  %2116 = vmatpush3.msra.mxu0 %v1707_v63  ;;  %v2843_v55 = vld [vmem:[#allocation2 + $0x42] sm:$0xff]  ;;  %v1736_v57 = vld [vmem:[%s3154_s3 + $0x258] sm:$0xff]  ;;  %v1735_v59 = vld [vmem:[%s3154_s3 + $0x250] sm:$0xff] }
  0x32   : > { %2160 = vmatpush3.msra.mxu1 %v1723_v0  ;;  %2117 = vmatprep.subr.mxu0 %v1706_v2  ;;  %v1751_v60 = vld [vmem:[%s3154_s3 + $0x2d0] sm:$0xff]  ;;  %v2863_v61 = vld [vmem:[#allocation2 + $0x62] sm:$0xff] }
  0x33   : > { %2161 = vmatprep.subr.mxu1 %v1722_v3  ;;  %2118 = vmatpush3.msra.mxu0 %v1706_v2  ;;  %v2865_v62 = vld [vmem:[#allocation2 + $0x72] sm:$0xff]  ;;  %v1734_v63 = vld [vmem:[%s3154_s3 + $0x248] sm:$0xff]  ;;  %v1733_v2 = vld [vmem:[%s3154_s3 + $0x240] sm:$0xff] }
  0x34   : > { %2162 = vmatpush3.msra.mxu1 %v1722_v3  ;;  %2119 = vmatprep.subr.mxu0 %v1705_v4  ;;  %v1750_v0 = vld [vmem:[%s3154_s3 + $0x2c8] sm:$0xff]  ;;  %v2879_v3 = vld [vmem:[#allocation2 + $0x80] sm:$0xff] }
  0x35   : > { %2163 = vmatprep.subr.mxu1 %v1721_v5  ;;  %2120 = vmatpush3.msra.mxu0 %v1705_v4  ;;  %v1749_v4 = vld [vmem:[%s3154_s3 + $0x2c0] sm:$0xff] }
  0x36   : > { %2164 = vmatpush3.msra.mxu1 %v1721_v5  ;;  %2121 = vmatprep.subr.mxu0 %v1704_v6  ;;  %v1732_v5 = vld [vmem:[%s3154_s3 + $0x238] sm:$0xff] }
  0x37   : > { %2165 = vmatprep.subr.mxu1 %v1720_v7  ;;  %2122 = vmatpush3.msra.mxu0 %v1704_v6  ;;  %v1748_v6 = vld [vmem:[%s3154_s3 + $0x2b8] sm:$0xff] }
  0x38   : > { %2166 = vmatpush3.msra.mxu1 %v1720_v7  ;;  %2123 = vmatprep.subr.mxu0 %v1703_v8  ;;  %v1731_v7 = vld [vmem:[%s3154_s3 + $0x230] sm:$0xff] }
  0x39   : > { %2167 = vmatprep.subr.mxu1 %v1719_v9  ;;  %2124 = vmatpush3.msra.mxu0 %v1703_v8  ;;  %v1747_v8 = vld [vmem:[%s3154_s3 + $0x2b0] sm:$0xff] }
  0x3a   : > { %2168 = vmatpush3.msra.mxu1 %v1719_v9  ;;  %2125 = vmatprep.subr.mxu0 %v1702_v10  ;;  %v1730_v9 = vld [vmem:[%s3154_s3 + $0x228] sm:$0xff] }
  0x3b   : > { %2169 = vmatprep.subr.mxu1 %v1718_v11  ;;  %2126 = vmatpush3.msra.mxu0 %v1702_v10  ;;  %v1746_v10 = vld [vmem:[%s3154_s3 + $0x2a8] sm:$0xff] }
  0x3c   : > { %2170 = vmatpush3.msra.mxu1 %v1718_v11  ;;  %2127 = vmatprep.subr.mxu0 %v1701_v12  ;;  %v1729_v11 = vld [vmem:[%s3154_s3 + $0x220] sm:$0xff] }
  0x3d   : > { %2171 = vmatprep.subr.mxu1 %v1717_v13  ;;  %2128 = vmatpush3.msra.mxu0 %v1701_v12  ;;  %v1745_v12 = vld [vmem:[%s3154_s3 + $0x2a0] sm:$0xff] }
  0x3e   : > { %2172 = vmatpush3.msra.mxu1 %v1717_v13  ;;  %2129 = vmatprep.subr.mxu0 %v1700_v14  ;;  %v1728_v13 = vld [vmem:[%s3154_s3 + $0x218] sm:$0xff] }
  0x3f   : > { %2173 = vmatprep.subr.mxu1 %v1716_v15  ;;  %2130 = vmatpush3.msra.mxu0 %v1700_v14  ;;  %v1744_v14 = vld [vmem:[%s3154_s3 + $0x298] sm:$0xff] }
  0x40   : > { %2174 = vmatpush3.msra.mxu1 %v1716_v15  ;;  %2060 = vmatprep.mubr.f32.mxu0 %v2623_v35  ;;  %v1727_v15 = vld [vmem:[%s3154_s3 + $0x210] sm:$0xff] }
  0x41   : > { %2104 = vmatprep.mubr.f32.mxu1 %v2741_v16  ;;  %2131 = vmatprep.subr.mxu0 %v1699_v17 }
  0x42   : > { %2175 = vmatprep.subr.mxu1 %v1715_v18  ;;  %2061 = vmatmul.mubr.f32.gmra.mxu0 %v2634_v40 }
  0x43   : > { %2105 = vmatmul.mubr.f32.gmra.mxu1 %v2749_v19  ;;  %2132 = vmatpush3.msra.mxu0 %v1699_v17  ;;  %v1743_v17 = vld [vmem:[%s3154_s3 + $0x290] sm:$0xff] }
  0x44   : > { %2176 = vmatpush3.msra.mxu1 %v1715_v18  ;;  %2133 = vmatprep.subr.mxu0 %v1698_v20  ;;  %v1726_v18 = vld [vmem:[%s3154_s3 + $0x208] sm:$0xff] }
  0x45   : > { %2177 = vmatprep.subr.mxu1 %v1714_v21  ;;  %2134 = vmatpush3.msra.mxu0 %v1698_v20  ;;  %v1742_v20 = vld [vmem:[%s3154_s3 + $0x288] sm:$0xff] }
  0x46   : > { %2178 = vmatpush3.msra.mxu1 %v1714_v21  ;;  %2063 = vmatprep.mubr.f32.mxu0 %v2640_v43  ;;  %v1725_v21 = vld [vmem:[%s3154_s3 + $0x200] sm:$0xff] }
  0x47   : > { %2107 = vmatprep.mubr.f32.mxu1 %v2761_v22  ;;  %2135 = vmatprep.subr.mxu0 %v1697_v24 }
  0x48   : > { %2179 = vmatprep.subr.mxu1 %v1713_v25  ;;  %2064 = vmatmul.mubr.f32.gmra.mxu0 %v2652_v48 }
  0x49   : > { %2108 = vmatmul.mubr.f32.gmra.mxu1 %v2769_v26  ;;  %2136 = vmatpush3.msra.mxu0 %v1697_v24  ;;  %v1741_v24 = vld [vmem:[%s3154_s3 + $0x280] sm:$0xff] }
  0x4a   : > { %2180 = vmatpush3.msra.mxu1 %v1713_v25  ;;  %2137 = vmatprep.subr.mxu0 %v1696_v27  ;;  %v1772_v25 = vld [vmem:[%s3154_s3 + $0x378] sm:$0xff] }
  0x4b   : > { %2181 = vmatprep.subr.mxu1 %v1712_v28  ;;  %2138 = vmatpush3.msra.mxu0 %v1696_v27  ;;  %v1788_v27 = vld [vmem:[%s3154_s3 + $0x3f8] sm:$0xff] }
  0x4c   : > { %2182 = vmatpush3.msra.mxu1 %v1712_v28  ;;  %2066 = vmatprep.mubr.f32.mxu0 %v2657_v50  ;;  %v1771_v28 = vld [vmem:[%s3154_s3 + $0x370] sm:$0xff] }
  0x4d   : > { %2110 = vmatprep.mubr.f32.mxu1 %v2781_v29  ;;  %2139 = vmatprep.subr.mxu0 %v1695_v30 }
  0x4e   : > { %2183 = vmatprep.subr.mxu1 %v1711_v31  ;;  %2067 = vmatmul.mubr.f32.gmra.mxu0 %v2667_v53 }
  0x4f   : > { %2111 = vmatmul.mubr.f32.gmra.mxu1 %v2789_v32  ;;  %2140 = vmatpush3.msra.mxu0 %v1695_v30  ;;  %v1787_v30 = vld [vmem:[%s3154_s3 + $0x3f0] sm:$0xff] }
  0x50   : > { %2184 = vmatpush3.msra.mxu1 %v1711_v31  ;;  %2141 = vmatprep.subr.mxu0 %v1694_v33  ;;  %v1786_v31 = vld [vmem:[%s3154_s3 + $0x3e8] sm:$0xff] }
  0x51   : > { %2185 = vmatprep.subr.mxu1 %v1710_v34  ;;  %2142 = vmatpush3.msra.mxu0 %v1694_v33  ;;  %v1769_v33 = vld [vmem:[%s3154_s3 + $0x360] sm:$0xff] }
  0x52   : > { %2186 = vmatpush3.msra.mxu1 %v1710_v34  ;;  %2143 = vmatprep.subr.mxu0 %v1693_v36  ;;  %v1785_v34 = vld [vmem:[%s3154_s3 + $0x3e0] sm:$0xff] }
  0x53   : > { %2187 = vmatprep.subr.mxu1 %v1709_v37  ;;  %2144 = vmatpush3.msra.mxu0 %v1693_v36  ;;  %v1768_v36 = vld [vmem:[%s3154_s3 + $0x358] sm:$0xff] }
  0x54   : > { %2145 = vmatprep.mubr.f32.mxu0 %v567_v38  ;;  %2188 = vmatpush3.msra.mxu1 %v1709_v37  ;;  %v1784_v37 = vld [vmem:[%s3154_s3 + $0x3d8] sm:$0xff]  ;;  %v1767_v38 = vld [vmem:[%s3154_s3 + $0x350] sm:$0xff] }
  0x55   : > { %2146 = vmatmul.mubr.f32.vlgmr.msra.gmra.mxu0 %v2807_v39  ;;  %2189 = vmatprep.mubr.f32.mxu1 %v2677_v58  ;;  %v1752_v58 = vld [vmem:[%s3154_s3 + $0x2d8] sm:$0xff] }
  0x56   : > { %2201 = vmatprep.subr.mxu0 %v1740_v41  ;;  %2245 = vmatprep.subr.mxu1 %v1756_v42 }
  0x57   : > { %2190 = vmatmul.mubr.f32.vlgmr.msra.gmra.mxu1 %v2741_v16  ;;  %2202 = vmatpush3.msra.mxu0 %v1740_v41  ;;  %v1766_v41 = vld [vmem:[%s3154_s3 + $0x348] sm:$0xff] }
  0x58   : > { %2246 = vmatpush3.msra.mxu1 %v1756_v42  ;;  %2203 = vmatprep.subr.mxu0 %v1739_v44  ;;  %v1782_v42 = vld [vmem:[%s3154_s3 + $0x3c8] sm:$0xff] }
  0x59   : > { %2247 = vmatprep.subr.mxu1 %v1755_v45  ;;  %2148 = vmatprep.mubr.f32.mxu0 %v2824_v46 }
  0x5a   : > { %2204 = vmatpush3.msra.mxu0 %v1739_v44  ;;  %2248 = vmatpush3.msra.mxu1 %v1755_v45  ;;  %v1765_v44 = vld [vmem:[%s3154_s3 + $0x340] sm:$0xff] }
  0x5b   : > { %2149 = vmatmul.mubr.f32.gmra.mxu0 %v2826_v47  ;;  %2205 = vmatprep.subr.mxu0 %v1738_v49  ;;  %v2993_v45 = vld [vmem:[#allocation2 + $0x82] sm:$0xff] }
  0x5c   : > { %2249 = vmatprep.subr.mxu1 %v1754_v51  ;;  %2192 = vmatprep.mubr.f32.mxu1 %v2749_v19 }
  0x5d   : > { %2206 = vmatpush3.msra.mxu0 %v1738_v49  ;;  %2250 = vmatpush3.msra.mxu1 %v1754_v51  ;;  %v1781_v49 = vld [vmem:[%s3154_s3 + $0x3c0] sm:$0xff]  ;;  %v1764_v51 = vld [vmem:[%s3154_s3 + $0x338] sm:$0xff] }
  0x5e   : > { %2207 = vmatprep.subr.mxu0 %v1737_v52  ;;  %2193 = vmatmul.mubr.f32.gmra.mxu1 %v2761_v22 }
  0x5f   : > { %2251 = vmatprep.subr.mxu1 %v1753_v54  ;;  %2151 = vmatprep.mubr.f32.mxu0 %v2843_v55 }
  0x60   : > { %2208 = vmatpush3.msra.mxu0 %v1737_v52  ;;  %2252 = vmatpush3.msra.mxu1 %v1753_v54  ;;  %v1780_v52 = vld [vmem:[%s3154_s3 + $0x3b8] sm:$0xff]  ;;  %v1763_v54 = vld [vmem:[%s3154_s3 + $0x330] sm:$0xff] }
  0x61   : > { %2152 = vmatmul.mubr.f32.gmra.mxu0 %v2845_v56  ;;  %2209 = vmatprep.subr.mxu0 %v1736_v57 }
  0x62   : > { %2253 = vmatprep.subr.mxu1 %v1752_v58  ;;  %2195 = vmatprep.mubr.f32.mxu1 %v2769_v26 }
  0x63   : > { %2210 = vmatpush3.msra.mxu0 %v1736_v57  ;;  %2254 = vmatpush3.msra.mxu1 %v1752_v58  ;;  %v1779_v57 = vld [vmem:[%s3154_s3 + $0x3b0] sm:$0xff]  ;;  %v1762_v58 = vld [vmem:[%s3154_s3 + $0x328] sm:$0xff] }
  0x64   : > { %2211 = vmatprep.subr.mxu0 %v1735_v59  ;;  %2196 = vmatmul.mubr.f32.gmra.mxu1 %v2781_v29 }
  0x65   : > { %2255 = vmatprep.subr.mxu1 %v1751_v60  ;;  %2154 = vmatprep.mubr.f32.mxu0 %v2863_v61 }
  0x66   : > { %2212 = vmatpush3.msra.mxu0 %v1735_v59  ;;  %2256 = vmatpush3.msra.mxu1 %v1751_v60  ;;  %v1778_v59 = vld [vmem:[%s3154_s3 + $0x3a8] sm:$0xff]  ;;  %v1761_v60 = vld [vmem:[%s3154_s3 + $0x320] sm:$0xff] }
  0x67   : > { %2155 = vmatmul.mubr.f32.gmra.mxu0 %v2865_v62  ;;  %2213 = vmatprep.subr.mxu0 %v1734_v63 }
  0x68   : > { %2257 = vmatprep.subr.mxu1 %v1750_v0  ;;  %2198 = vmatprep.mubr.f32.mxu1 %v2789_v32 }
  0x69   : > { %2214 = vmatpush3.msra.mxu0 %v1734_v63  ;;  %2258 = vmatpush3.msra.mxu1 %v1750_v0  ;;  %v1777_v63 = vld [vmem:[%s3154_s3 + $0x3a0] sm:$0xff]  ;;  %v1760_v0 = vld [vmem:[%s3154_s3 + $0x318] sm:$0xff] }
  0x6a   : > { %2215 = vmatprep.subr.mxu0 %v1733_v2  ;;  %2199 = vmatmul.mubr.f32.gmra.mxu1 %v2879_v3 }
  0x6b   : > { %2259 = vmatprep.subr.mxu1 %v1749_v4  ;;  %2216 = vmatpush3.msra.mxu0 %v1733_v2  ;;  %v1776_v2 = vld [vmem:[%s3154_s3 + $0x398] sm:$0xff] }
  0x6c   : > { %2260 = vmatpush3.msra.mxu1 %v1749_v4  ;;  %2217 = vmatprep.subr.mxu0 %v1732_v5  ;;  %v1759_v4 = vld [vmem:[%s3154_s3 + $0x310] sm:$0xff] }
  0x6d   : > { %2261 = vmatprep.subr.mxu1 %v1748_v6  ;;  %2218 = vmatpush3.msra.mxu0 %v1732_v5  ;;  %v1775_v5 = vld [vmem:[%s3154_s3 + $0x390] sm:$0xff] }
  0x6e   : > { %2262 = vmatpush3.msra.mxu1 %v1748_v6  ;;  %2219 = vmatprep.subr.mxu0 %v1731_v7  ;;  %v1758_v6 = vld [vmem:[%s3154_s3 + $0x308] sm:$0xff] }
  0x6f   : > { %2263 = vmatprep.subr.mxu1 %v1747_v8  ;;  %2220 = vmatpush3.msra.mxu0 %v1731_v7  ;;  %v1774_v7 = vld [vmem:[%s3154_s3 + $0x388] sm:$0xff] }
  0x70   : > { %2264 = vmatpush3.msra.mxu1 %v1747_v8  ;;  %2221 = vmatprep.subr.mxu0 %v1730_v9  ;;  %v1757_v8 = vld [vmem:[%s3154_s3 + $0x300] sm:$0xff] }
  0x71   : > { %2265 = vmatprep.subr.mxu1 %v1746_v10  ;;  %2222 = vmatpush3.msra.mxu0 %v1730_v9  ;;  %v1773_v9 = vld [vmem:[%s3154_s3 + $0x380] sm:$0xff] }
  0x72   : > { %2266 = vmatpush3.msra.mxu1 %v1746_v10  ;;  %2223 = vmatprep.subr.mxu0 %v1729_v11  ;;  %v1804_v10 = vld [vmem:[%s3154_s3 + $0x478] sm:$0xff] }
  0x73   : > { %2267 = vmatprep.subr.mxu1 %v1745_v12  ;;  %2224 = vmatpush3.msra.mxu0 %v1729_v11  ;;  %v1803_v11 = vld [vmem:[%s3154_s3 + $0x470] sm:$0xff] }
  0x74   : > { %2268 = vmatpush3.msra.mxu1 %v1745_v12  ;;  %2225 = vmatprep.subr.mxu0 %v1728_v13  ;;  %v1790_v12 = vld [vmem:[%s3154_s3 + $0x408] sm:$0xff] }
  0x75   : > { %2269 = vmatprep.subr.mxu1 %v1744_v14  ;;  %2226 = vmatpush3.msra.mxu0 %v1728_v13  ;;  %v1789_v13 = vld [vmem:[%s3154_s3 + $0x400] sm:$0xff] }
  0x76   : > { %2270 = vmatpush3.msra.mxu1 %v1744_v14  ;;  %2227 = vmatprep.subr.mxu0 %v1727_v15  ;;  %v1403_v14 = vld [vmem:[#allocation2 + $0x92] sm:$0xff] }
  0x77   : > { %2271 = vmatprep.subr.mxu1 %v1743_v17  ;;  %2228 = vmatpush3.msra.mxu0 %v1727_v15 }
  0x78   : > { %2272 = vmatpush3.msra.mxu1 %v1743_v17  ;;  %2229 = vmatprep.subr.mxu0 %v1726_v18 }
  0x79   : > { %2273 = vmatprep.subr.mxu1 %v1742_v20  ;;  %2230 = vmatpush3.msra.mxu0 %v1726_v18 }
  0x7a   : > { %2274 = vmatpush3.msra.mxu1 %v1742_v20  ;;  %2231 = vmatprep.subr.mxu0 %v1725_v21 }
  0x7b   : > { %2275 = vmatprep.subr.mxu1 %v1741_v24  ;;  %2232 = vmatpush3.msra.mxu0 %v1725_v21 }
  0x7c   : > { %2233 = vmatprep.mubr.f32.mxu0 %v2596_v23  ;;  %2276 = vmatpush3.msra.mxu1 %v1741_v24  ;;  %v1770_v23 = vld [vmem:[%s3154_s3 + $0x368] sm:$0xff] }
  0x7d   : > { %2234 = vmatmul.mubr.f32.vlgmr.msra.gmra.mxu0 %v2623_v35  ;;  %2277 = vmatprep.mubr.f32.mxu1 %v2807_v39  ;;  %v1783_v39 = vld [vmem:[%s3154_s3 + $0x3d0] sm:$0xff] }
  0x7e   : > { %2289 = vmatprep.subr.mxu0 %v1772_v25  ;;  %2333 = vmatprep.subr.mxu1 %v1788_v27 }
  0x7f   : > { %2278 = vmatmul.mubr.f32.vlgmr.msra.gmra.mxu1 %v2824_v46  ;;  %2290 = vmatpush3.msra.mxu0 %v1772_v25 }
  0x80   : > { %2334 = vmatpush3.msra.mxu1 %v1788_v27  ;;  %2291 = vmatprep.subr.mxu0 %v1771_v28 }
  0x81   : > { %2335 = vmatprep.subr.mxu1 %v1787_v30  ;;  %2236 = vmatprep.mubr.f32.mxu0 %v2634_v40 }
  0x82   : > { %2292 = vmatpush3.msra.mxu0 %v1771_v28  ;;  %2336 = vmatpush3.msra.mxu1 %v1787_v30 }
  0x83   : > { %2237 = vmatmul.mubr.f32.gmra.mxu0 %v2640_v43  ;;  %2293 = vmatprep.subr.mxu0 %v1770_v23 }
  0x84   : > { %2337 = vmatprep.subr.mxu1 %v1786_v31  ;;  %2280 = vmatprep.mubr.f32.mxu1 %v2826_v47 }
  0x85   : > { %2294 = vmatpush3.msra.mxu0 %v1770_v23  ;;  %2338 = vmatpush3.msra.mxu1 %v1786_v31 }
  0x86   : > { %2295 = vmatprep.subr.mxu0 %v1769_v33  ;;  %2281 = vmatmul.mubr.f32.gmra.mxu1 %v2843_v55 }
  0x87   : > { %2339 = vmatprep.subr.mxu1 %v1785_v34  ;;  %2239 = vmatprep.mubr.f32.mxu0 %v2652_v48 }
  0x88   : > { %2296 = vmatpush3.msra.mxu0 %v1769_v33  ;;  %2340 = vmatpush3.msra.mxu1 %v1785_v34 }
  0x89   : > { %2240 = vmatmul.mubr.f32.gmra.mxu0 %v2657_v50  ;;  %2297 = vmatprep.subr.mxu0 %v1768_v36 }
  0x8a   : > { %2341 = vmatprep.subr.mxu1 %v1784_v37  ;;  %2283 = vmatprep.mubr.f32.mxu1 %v2845_v56 }
  0x8b   : > { %2298 = vmatpush3.msra.mxu0 %v1768_v36  ;;  %2342 = vmatpush3.msra.mxu1 %v1784_v37 }
  0x8c   : > { %2299 = vmatprep.subr.mxu0 %v1767_v38  ;;  %2284 = vmatmul.mubr.f32.gmra.mxu1 %v2863_v61 }
  0x8d   : > { %2343 = vmatprep.subr.mxu1 %v1783_v39  ;;  %2242 = vmatprep.mubr.f32.mxu0 %v2667_v53 }
  0x8e   : > { %2300 = vmatpush3.msra.mxu0 %v1767_v38  ;;  %2344 = vmatpush3.msra.mxu1 %v1783_v39 }
  0x8f   : > { %2243 = vmatmul.mubr.f32.gmra.mxu0 %v2696_v1  ;;  %2301 = vmatprep.subr.mxu0 %v1766_v41 }
  0x90   : > { %2345 = vmatprep.subr.mxu1 %v1782_v42  ;;  %2286 = vmatprep.mubr.f32.mxu1 %v2865_v62 }
  0x91   : > { %2302 = vmatpush3.msra.mxu0 %v1766_v41  ;;  %2346 = vmatpush3.msra.mxu1 %v1782_v42 }
  0x92   : > { %2303 = vmatprep.subr.mxu0 %v1765_v44  ;;  %2287 = vmatmul.mubr.f32.gmra.mxu1 %v2993_v45 }
  0x93   : > { %2347 = vmatprep.subr.mxu1 %v1781_v49  ;;  %2304 = vmatpush3.msra.mxu0 %v1765_v44 }
  0x94   : > { %2348 = vmatpush3.msra.mxu1 %v1781_v49  ;;  %2305 = vmatprep.subr.mxu0 %v1764_v51 }
  0x95   : > { %2349 = vmatprep.subr.mxu1 %v1780_v52  ;;  %2306 = vmatpush3.msra.mxu0 %v1764_v51 }
  0x96   : > { %2350 = vmatpush3.msra.mxu1 %v1780_v52  ;;  %2307 = vmatprep.subr.mxu0 %v1763_v54 }
  0x97   : > { %2351 = vmatprep.subr.mxu1 %v1779_v57  ;;  %2308 = vmatpush3.msra.mxu0 %v1763_v54 }
  0x98   : > { %2352 = vmatpush3.msra.mxu1 %v1779_v57  ;;  %2309 = vmatprep.subr.mxu0 %v1762_v58 }
  0x99   : > { %2353 = vmatprep.subr.mxu1 %v1778_v59  ;;  %2310 = vmatpush3.msra.mxu0 %v1762_v58 }
  0x9a   : > { %2354 = vmatpush3.msra.mxu1 %v1778_v59  ;;  %2311 = vmatprep.subr.mxu0 %v1761_v60 }
  0x9b   : > { %2355 = vmatprep.subr.mxu1 %v1777_v63  ;;  %2312 = vmatpush3.msra.mxu0 %v1761_v60 }
  0x9c   : > { %2356 = vmatpush3.msra.mxu1 %v1777_v63  ;;  %2313 = vmatprep.subr.mxu0 %v1760_v0 }
  0x9d   : > { %2357 = vmatprep.subr.mxu1 %v1776_v2  ;;  %2314 = vmatpush3.msra.mxu0 %v1760_v0 }
  0x9e   : > { %2358 = vmatpush3.msra.mxu1 %v1776_v2  ;;  %2315 = vmatprep.subr.mxu0 %v1759_v4 }
  0x9f   : > { %2359 = vmatprep.subr.mxu1 %v1775_v5  ;;  %2316 = vmatpush3.msra.mxu0 %v1759_v4 }
  0xa0   : > { %2360 = vmatpush3.msra.mxu1 %v1775_v5  ;;  %2317 = vmatprep.subr.mxu0 %v1758_v6 }
  0xa1   : > { %2361 = vmatprep.subr.mxu1 %v1774_v7  ;;  %2318 = vmatpush3.msra.mxu0 %v1758_v6 }
  0xa2   : > { %2362 = vmatpush3.msra.mxu1 %v1774_v7  ;;  %2319 = vmatprep.subr.mxu0 %v1757_v8 }
  0xa3   : > { %2363 = vmatprep.subr.mxu1 %v1773_v9  ;;  %2320 = vmatpush3.msra.mxu0 %v1757_v8 }
  0xa4   : > { %2321 = vmatprep.mubr.f32.mxu0 %v2741_v16  ;;  %2364 = vmatpush3.msra.mxu1 %v1773_v9  ;;  %v1802_v16 = vld [vmem:[%s3154_s3 + $0x468] sm:$0xff] }
  0xa5   : > { %2322 = vmatmul.mubr.f32.vlgmr.msra.gmra.mxu0 %v2749_v19  ;;  %2365 = vmatprep.mubr.f32.mxu1 %v2623_v35  ;;  %v1801_v35 = vld [vmem:[%s3154_s3 + $0x460] sm:$0xff]  ;;  %v1798_v19 = vld [vmem:[%s3154_s3 + $0x448] sm:$0xff] }
  0xa6   : > { %2377 = vmatprep.subr.mxu0 %v1804_v10  ;;  %2421 = vmatprep.subr.mxu1 %v1804_v10 }
  0xa7   : > { %2366 = vmatmul.mubr.f32.vlgmr.msra.gmra.mxu1 %v2634_v40  ;;  %2378 = vmatpush3.msra.mxu0 %v1804_v10  ;;  %v1800_v40 = vld [vmem:[%s3154_s3 + $0x458] sm:$0xff] }
  0xa8   : > { %2437 = vmatpush3.msra.mxu1 %v1804_v10  ;;  %2379 = vmatprep.subr.mxu0 %v1803_v11 }
  0xa9   : > { %2422 = vmatprep.subr.mxu1 %v1803_v11  ;;  %2324 = vmatprep.mubr.f32.mxu0 %v2761_v22  ;;  %v1265_v22 = vld [vmem:[#allocation2 + $0x91] sm:$0xff] }
  0xaa   : > { %2380 = vmatpush3.msra.mxu0 %v1803_v11  ;;  %2438 = vmatpush3.msra.mxu1 %v1803_v11 }
  0xab   : > { %2325 = vmatmul.mubr.f32.gmra.mxu0 %v2769_v26  ;;  %2381 = vmatprep.subr.mxu0 %v1802_v16  ;;  %v1795_v26 = vld [vmem:[%s3154_s3 + $0x430] sm:$0xff] }
  0xac   : > { %2423 = vmatprep.subr.mxu1 %v1802_v16  ;;  %2368 = vmatprep.mubr.f32.mxu1 %v2640_v43  ;;  %v1799_v43 = vld [vmem:[%s3154_s3 + $0x450] sm:$0xff] }
  0xad   : > { %2382 = vmatpush3.msra.mxu0 %v1802_v16  ;;  %2439 = vmatpush3.msra.mxu1 %v1802_v16 }
  0xae   : > { %2383 = vmatprep.subr.mxu0 %v1801_v35  ;;  %2369 = vmatmul.mubr.f32.gmra.mxu1 %v2652_v48  ;;  %v1127_v48 = vld [vmem:[#allocation2 + $0x90] sm:$0xff] }
  0xaf   : > { %2424 = vmatprep.subr.mxu1 %v1801_v35  ;;  %2327 = vmatprep.mubr.f32.mxu0 %v2781_v29  ;;  %v1793_v29 = vld [vmem:[%s3154_s3 + $0x420] sm:$0xff] }
  0xb0   : > { %2384 = vmatpush3.msra.mxu0 %v1801_v35  ;;  %2440 = vmatpush3.msra.mxu1 %v1801_v35 }
  0xb1   : > { %2328 = vmatmul.mubr.f32.gmra.mxu0 %v2789_v32  ;;  %2385 = vmatprep.subr.mxu0 %v1800_v40  ;;  %v1792_v32 = vld [vmem:[%s3154_s3 + $0x418] sm:$0xff] }
  0xb2   : > { %2425 = vmatprep.subr.mxu1 %v1800_v40  ;;  %2371 = vmatprep.mubr.f32.mxu1 %v2657_v50  ;;  %v1797_v50 = vld [vmem:[%s3154_s3 + $0x440] sm:$0xff] }
  0xb3   : > { %2386 = vmatpush3.msra.mxu0 %v1800_v40  ;;  %2441 = vmatpush3.msra.mxu1 %v1800_v40 }
  0xb4   : > { %2387 = vmatprep.subr.mxu0 %v1799_v43  ;;  %2372 = vmatmul.mubr.f32.gmra.mxu1 %v2667_v53  ;;  %v1796_v53 = vld [vmem:[%s3154_s3 + $0x438] sm:$0xff] }
  0xb5   : > { %2426 = vmatprep.subr.mxu1 %v1799_v43  ;;  %2330 = vmatprep.mubr.f32.mxu0 %v2879_v3  ;;  %v1791_v3 = vld [vmem:[%s3154_s3 + $0x410] sm:$0xff] }
  0xb6   : > { %2388 = vmatpush3.msra.mxu0 %v1799_v43  ;;  %2442 = vmatpush3.msra.mxu1 %v1799_v43 }
  0xb7   : > { %2331 = vmatmul.mubr.f32.gmra.mxu0 %v1127_v48  ;;  %2389 = vmatprep.subr.mxu0 %v1798_v19 }
  0xb8   : > { %2427 = vmatprep.subr.mxu1 %v1798_v19  ;;  %2374 = vmatprep.mubr.f32.mxu1 %v2696_v1  ;;  %v1794_v1 = vld [vmem:[%s3154_s3 + $0x428] sm:$0xff] }
  0xb9   : > { %2390 = vmatpush3.msra.mxu0 %v1798_v19  ;;  %2443 = vmatpush3.msra.mxu1 %v1798_v19 }
  0xba   : > { %2391 = vmatprep.subr.mxu0 %v1797_v50  ;;  %2375 = vmatmul.mubr.f32.gmra.mxu1 %v1265_v22 }
  0xbb   : > { %2428 = vmatprep.subr.mxu1 %v1797_v50  ;;  %2392 = vmatpush3.msra.mxu0 %v1797_v50 }
  0xbc   : > { %2444 = vmatpush3.msra.mxu1 %v1797_v50  ;;  %2393 = vmatprep.subr.mxu0 %v1796_v53 }
  0xbd   : > { %2429 = vmatprep.subr.mxu1 %v1796_v53  ;;  %2394 = vmatpush3.msra.mxu0 %v1796_v53 }
  0xbe   : > { %2445 = vmatpush3.msra.mxu1 %v1796_v53  ;;  %2395 = vmatprep.subr.mxu0 %v1795_v26 }
  0xbf   : > { %2430 = vmatprep.subr.mxu1 %v1795_v26  ;;  %2396 = vmatpush3.msra.mxu0 %v1795_v26 }
  0xc0   : > { %2446 = vmatpush3.msra.mxu1 %v1795_v26  ;;  %2397 = vmatprep.subr.mxu0 %v1794_v1 }
  0xc1   : > { %2431 = vmatprep.subr.mxu1 %v1794_v1  ;;  %2398 = vmatpush3.msra.mxu0 %v1794_v1 }
  0xc2   : > { %2447 = vmatpush3.msra.mxu1 %v1794_v1  ;;  %2399 = vmatprep.subr.mxu0 %v1793_v29 }
  0xc3   : > { %2432 = vmatprep.subr.mxu1 %v1793_v29  ;;  %2400 = vmatpush3.msra.mxu0 %v1793_v29 }
  0xc4   : > { %2448 = vmatpush3.msra.mxu1 %v1793_v29  ;;  %2401 = vmatprep.subr.mxu0 %v1792_v32 }
  0xc5   : > { %2433 = vmatprep.subr.mxu1 %v1792_v32  ;;  %2402 = vmatpush3.msra.mxu0 %v1792_v32 }
  0xc6   : > { %2449 = vmatpush3.msra.mxu1 %v1792_v32  ;;  %2403 = vmatprep.subr.mxu0 %v1791_v3 }
  0xc7   : > { %2434 = vmatprep.subr.mxu1 %v1791_v3  ;;  %2404 = vmatpush3.msra.mxu0 %v1791_v3 }
  0xc8   : > { %2450 = vmatpush3.msra.mxu1 %v1791_v3  ;;  %2405 = vmatprep.subr.mxu0 %v1790_v12 }
  0xc9   : > { %2435 = vmatprep.subr.mxu1 %v1790_v12  ;;  %2406 = vmatpush3.msra.mxu0 %v1790_v12 }
  0xca   : > { %2451 = vmatpush3.msra.mxu1 %v1790_v12  ;;  %2407 = vmatprep.subr.mxu0 %v1789_v13 }
  0xcb   : > { %2436 = vmatprep.subr.mxu1 %v1789_v13  ;;  %2408 = vmatpush3.msra.mxu0 %v1789_v13 }
  0xcc   : > { %2452 = vmatpush3.msra.mxu1 %v1789_v13  ;;  %2409 = vmatprep.mubr.f32.mxu0 %v2824_v46 }
  0xcd   : > { %2415 = vmatprep.mubr.f32.mxu1 %v2863_v61  ;;  %2410 = vmatmul.mubr.f32.vlgmr.msra.gmra.mxu0 %v2826_v47 }
  0xce   : > { %2416 = vmatmul.mubr.f32.vlgmr.msra.gmra.mxu1 %v2865_v62  ;;  %2412 = vmatprep.mubr.f32.mxu0 %v2843_v55 }
  0xcf   : > { %2418 = vmatprep.mubr.f32.mxu1 %v2993_v45 }
  0xd1   : > { %2413 = vmatmul.mubr.f32.gmra.mxu0 %v2845_v56 }
  0xd2   : > { %2419 = vmatmul.mubr.f32.gmra.mxu1 %v1403_v14 }
  0xed   : > { %v2059_v15 = vpop.f32.mrf.mxu0 }
  0xee   : > { %v2103_v17 = vpop.f32.mrf.mxu1 }
  0xef   : > { %v423_v18 = vpop.f32.mrf.mxu0  ;;  %v534_v22 = vadd.f32 %v2103_v17, %v2059_v15 }
  0xf0   : > { %v528_v20 = vpop.f32.mrf.mxu1 }
  0xf1   : > { %v529_v26 = vadd.f32 %v528_v20, %v423_v18 }
 0x102   : > { %v2062_v21 = vpop.f32.mrf.mxu0 }
 0x103   : > { %v2106_v46 = vpop.f32.mrf.mxu1 }
 0x104   : > { %v433_v24 = vpop.f32.mrf.mxu0  ;;  %v544_v14 = vadd.f32 %v2106_v46, %v2062_v21 }
 0x105   : > { %v538_v61 = vpop.f32.mrf.mxu1 }
 0x108   : > { %v2065_v25 = vpop.f32.mrf.mxu0 }
 0x109   : > { %v2109_v47 = vpop.f32.mrf.mxu1 }
 0x10a   : > { %v443_v27 = vpop.f32.mrf.mxu0  ;;  %v554_v53 = vadd.f32 %v2109_v47, %v2065_v25 }
 0x10b   : > { %v548_v62 = vpop.f32.mrf.mxu1 }
 0x10c   : > { %v549_v32 = vadd.f32 %v548_v62, %v443_v27 }
 0x10e   : > { %v2068_v28 = vpop.f32.mrf.mxu0 }
 0x10f   : > { %v2112_v55 = vpop.f32.mrf.mxu1 }
 0x110   : > { %v453_v30 = vpop.f32.mrf.mxu0 }
 0x111   : > { %v558_v23 = vpop.f32.mrf.mxu1 }
 0x112   : > { %v559_v25 = vadd.f32 %v558_v23, %v453_v30 }
 0x115   : > { %v2147_v31 = vpop.f32.mrf.mxu0 }
 0x116   : > { %v698_v3 = vadd.f32 %v2147_v31, %v534_v22 }
 0x117   : > { %v2191_v33 = vpop.f32.mrf.mxu1  ;;  %v658_v56 = vpop.f32.mrf.mxu0 }
 0x118   : > { %v697_v13 = vadd.f32 %v658_v56, %v529_v26  ;;  %v836_v47 = vadd.f32 %v2191_v33, %v698_v3 }
 0x119   : > { %v796_v34 = vpop.f32.mrf.mxu1 }
 0x11b   : > { %v2150_v36 = vpop.f32.mrf.mxu0 }
 0x11c   : > { %v700_v18 = vadd.f32 %v2150_v36, %v544_v14 }
 0x11d   : > { %v668_v38 = vpop.f32.mrf.mxu0 }
 0x11e   : > { %v2194_v37 = vpop.f32.mrf.mxu1 }
 0x11f   : > { %v838_v46 = vadd.f32 %v2194_v37, %v700_v18 }
 0x120   : > { %v806_v39 = vpop.f32.mrf.mxu1 }
 0x121   : > { %v2153_v41 = vpop.f32.mrf.mxu0 }
 0x122   : > { %v702_v12 = vadd.f32 %v2153_v41, %v554_v53 }
 0x123   : > { %v678_v44 = vpop.f32.mrf.mxu0 }
 0x124   : > { %v2197_v42 = vpop.f32.mrf.mxu1 }
 0x125   : > { %v840_v20 = vadd.f32 %v2197_v42, %v702_v12 }
 0x126   : > { %v816_v45 = vpop.f32.mrf.mxu1 }
 0x127   : > { %v2156_v49 = vpop.f32.mrf.mxu0 }
 0x129   : > { %v688_v52 = vpop.f32.mrf.mxu0 }
 0x12a   : > { %v2200_v51 = vpop.f32.mrf.mxu1  ;;  %v703_v31 = vadd.f32 %v688_v52, %v559_v25 }
 0x12c   : > { %v826_v54 = vpop.f32.mrf.mxu1 }
 0x13d   : > { %v2235_v57 = vpop.f32.mrf.mxu0 }
 0x13e   : > { %v974_v41 = vadd.f32 %v2235_v57, %v836_v47 }
 0x13f   : > { %v2279_v58 = vpop.f32.mrf.mxu1  ;;  %v934_v59 = vpop.f32.mrf.mxu0 }
 0x141   : > { %v1072_v60 = vpop.f32.mrf.mxu1 }
 0x143   : > { %v2238_v63 = vpop.f32.mrf.mxu0 }
 0x144   : > { %v976_v30 = vadd.f32 %v2238_v63, %v838_v46 }
 0x145   : > { %v944_v2 = vpop.f32.mrf.mxu0 }
 0x146   : > { %v3117_v0 = vpop.f32.mrf.mxu1 }
 0x147   : > { %3158 = vst [vmem:[#allocation3_spill] sm:$0xff] %v3117_v0  ;;  %v539_v0 = vadd.f32 %v538_v61, %v433_v24 }
 0x148   : > { %v3119_v4 = vpop.f32.mrf.mxu1 }
 0x149   : > { %3159 = vst [vmem:[#allocation4_spill] sm:$0xff] %v3119_v4  ;;  %v2241_v5 = vpop.f32.mrf.mxu0  ;;  %v701_v4 = vadd.f32 %v678_v44, %v549_v32  ;;  %v699_v27 = vadd.f32 %v668_v38, %v539_v0 }
 0x14a   : > { %v978_v53 = vadd.f32 %v2241_v5, %v840_v20 }
 0x14b   : > { %v954_v7 = vpop.f32.mrf.mxu0  ;;  %v839_v22 = vadd.f32 %v816_v45, %v701_v4  ;;  %v837_v24 = vadd.f32 %v806_v39, %v699_v27 }
 0x14c   : > { %v2285_v6 = vpop.f32.mrf.mxu1 }
 0x14d   : > { %v977_v44 = vadd.f32 %v954_v7, %v839_v22  ;;  %v1116_v23 = vadd.f32 %v2285_v6, %v978_v53  ;;  %v975_v36 = vadd.f32 %v944_v2, %v837_v24 }
 0x14e   : > { %v1092_v8 = vpop.f32.mrf.mxu1  ;;  %v3162_v0 = vld [vmem:[#allocation3_spill] sm:$0xff] }
 0x14f   : > { %v2244_v9 = vpop.f32.mrf.mxu0  ;;  %v1115_v45 = vadd.f32 %v1092_v8, %v977_v44  ;;  %v1114_v37 = vadd.f32 %v3162_v0, %v976_v30 }
 0x150   : > { %v3163_v39 = vld [vmem:[#allocation4_spill] sm:$0xff] }
 0x151   : > { %v964_v11 = vpop.f32.mrf.mxu0 }
 0x152   : > { %v2288_v10 = vpop.f32.mrf.mxu1 }
 0x154   : > { %v1102_v16 = vpop.f32.mrf.mxu1 }
 0x165   : > { %v2323_v35 = vpop.f32.mrf.mxu0 }
 0x167   : > { %v2367_v40 = vpop.f32.mrf.mxu1  ;;  %v1211_v43 = vpop.f32.mrf.mxu0 }
 0x169   : > { %v1349_v48 = vpop.f32.mrf.mxu1 }
 0x16b   : > { %v2326_v19 = vpop.f32.mrf.mxu0 }
 0x16c   : > { %v1253_v2 = vadd.f32 %v2326_v19, %v1114_v37 }
 0x16d   : > { %v1221_v1 = vpop.f32.mrf.mxu0 }
 0x16e   : > { %v3121_v50 = vpop.f32.mrf.mxu1 }
 0x16f   : > { %3160 = vst [vmem:[#allocation5_spill] sm:$0xff] %v3121_v50  ;;  %v564_v50 = vadd.f32 %v2112_v55, %v2068_v28  ;;  %v841_v28 = vadd.f32 %v826_v54, %v703_v31  ;;  %v1112_v55 = vadd.f32 %v2279_v58, %v974_v41 }
 0x170   : > { %v3123_v29 = vpop.f32.mrf.mxu1 }
 0x171   : > { %3161 = vst [vmem:[#allocation6_spill] sm:$0xff] %v3123_v29  ;;  %v2329_v15 = vpop.f32.mrf.mxu0  ;;  %v835_v29 = vadd.f32 %v796_v34, %v697_v13  ;;  %v704_v62 = vadd.f32 %v2156_v49, %v564_v50  ;;  %v979_v49 = vadd.f32 %v964_v11, %v841_v28  ;;  %v1251_v52 = vadd.f32 %v2323_v35, %v1112_v55 }
 0x172   : > { %v1255_v57 = vadd.f32 %v2329_v15, %v1116_v23 }
 0x173   : > { %v973_v26 = vadd.f32 %v934_v59, %v835_v29  ;;  %v1231_v56 = vpop.f32.mrf.mxu0  ;;  %v842_v61 = vadd.f32 %v2200_v51, %v704_v62  ;;  %v1113_v51 = vadd.f32 %v3163_v39, %v975_v36  ;;  %v1117_v5 = vadd.f32 %v1102_v16, %v979_v49 }
 0x174   : > { %v2373_v17 = vpop.f32.mrf.mxu1  ;;  %v1254_v4 = vadd.f32 %v1231_v56, %v1115_v45 }
 0x175   : > { %v1111_v33 = vadd.f32 %v1072_v60, %v973_v26  ;;  %v980_v34 = vadd.f32 %v2244_v9, %v842_v61  ;;  %v1389_v60 = vadd.f32 %v2367_v40, %v1251_v52  ;;  %v1393_v6 = vadd.f32 %v2373_v17, %v1255_v57 }
 0x176   : > { %v1369_v21 = vpop.f32.mrf.mxu1  ;;  %v1252_v9 = vadd.f32 %v1221_v1, %v1113_v51  ;;  %v3164_v50 = vld [vmem:[#allocation5_spill] sm:$0xff] }
 0x177   : > { %v2332_v38 = vpop.f32.mrf.mxu0  ;;  %v1250_v59 = vadd.f32 %v1211_v43, %v1111_v33  ;;  %v1118_v54 = vadd.f32 %v2288_v10, %v980_v34  ;;  %v1392_v10 = vadd.f32 %v1369_v21, %v1254_v4  ;;  %v1391_v1 = vadd.f32 %v3164_v50, %v1253_v2 }
 0x178   : > { %v3165_v14 = vld [vmem:[#allocation6_spill] sm:$0xff] }
 0x179   : > { %v1241_v58 = vpop.f32.mrf.mxu0  ;;  %v1388_v7 = vadd.f32 %v1349_v48, %v1250_v59  ;;  %v1257_v8 = vadd.f32 %v2332_v38, %v1118_v54  ;;  %v1390_v15 = vadd.f32 %v3165_v14, %v1252_v9 }
 0x17a   : > { %v2376_v42 = vpop.f32.mrf.mxu1  ;;  %v1256_v43 = vadd.f32 %v1241_v58, %v1117_v5 }
 0x17b   : > { %v1395_v3 = vadd.f32 %v2376_v42, %v1257_v8 }
 0x17c   : > { %v1379_v63 = vpop.f32.mrf.mxu1 }
 0x17d   : > { %v1394_v17 = vadd.f32 %v1379_v63, %v1256_v43 }
 0x18d   : > { %v2411_v11 = vpop.f32.mrf.mxu0 }
 0x18e   : > { %v2417_v35 = vpop.f32.mrf.mxu1  ;;  %v1527_v16 = vadd.f32 %v2411_v11, %v1389_v60 }
 0x18f   : > { %v1531_v40 = vadd.f32 %v2417_v35, %v1393_v6  ;;  %v1487_v19 = vpop.f32.mrf.mxu0 }
 0x190   : > { %v1507_v48 = vpop.f32.mrf.mxu1  ;;  %1572 = vst [vmem:[%s3132_s9 + $0x8] sm:$0xff] %v1527_v16  ;;  %v1526_v29 = vadd.f32 %v1487_v19, %v1388_v7  ;;  %v1548_v62 = vmul.f32 %v1527_v16, %v1527_v16 }
 0x191   : > { %1576 = vst [vmem:[%s3132_s9 + $0x28] sm:$0xff] %v1531_v40  ;;  %v1530_v32 = vadd.f32 %v1507_v48, %v1392_v10  ;;  %v2414_v12 = vpop.f32.mrf.mxu0  ;;  %v1552_v55 = vmul.f32 %v1531_v40, %v1531_v40 }
 0x192   : > { %v2420_v13 = vpop.f32.mrf.mxu1  ;;  %v1547_v25 = vmul.f32 %v1526_v29, %v1526_v29  ;;  %1571 = vst [vmem:[%s3132_s9] sm:$0xff] %v1526_v29  ;;  %v1529_v47 = vadd.f32 %v2414_v12, %v1391_v1  ;;  %v1534_v22 = vadd.f32 %v1527_v16, %v1526_v29 }
 0x193   : > { %1575 = vst [vmem:[%s3132_s9 + $0x20] sm:$0xff] %v1530_v32  ;;  %v1533_v18 = vadd.f32 %v2420_v13, %v1395_v3  ;;  %v1497_v20 = vpop.f32.mrf.mxu0  ;;  %v1551_v24 = vmul.f32 %v1530_v32, %v1530_v32 }
 0x194   : > { %v1517_v27 = vpop.f32.mrf.mxu1  ;;  %1574 = vst [vmem:[%s3132_s9 + $0x18] sm:$0xff] %v1529_v47  ;;  %v1528_v31 = vadd.f32 %v1497_v20, %v1390_v15  ;;  %v1555_v53 = vadd.f32 %v1548_v62, %v1547_v25  ;;  %v1550_v21 = vmul.f32 %v1529_v47, %v1529_v47 }
 0x195   : > { %v1532_v41 = vadd.f32 %v1517_v27, %v1394_v17  ;;  %1578 = vst [vmem:[%s3132_s9 + $0x38] sm:$0xff] %v1533_v18  ;;  %v1554_v38 = vmul.f32 %v1533_v18, %v1533_v18 }
 0x196   : > { %v1535_v26 = vadd.f32 %v1534_v22, %v1528_v31  ;;  %v1549_v56 = vmul.f32 %v1528_v31, %v1528_v31  ;;  %1573 = vst [vmem:[%s3132_s9 + $0x10] sm:$0xff] %v1528_v31 }
 0x197   : > { %1577 = vst [vmem:[%s3132_s9 + $0x30] sm:$0xff] %v1532_v41  ;;  %v1553_v36 = vmul.f32 %v1532_v41, %v1532_v41 }
 0x198   : > { %v1536_v46 = vadd.f32 %v1535_v26, %v1529_v47  ;;  %v1556_v44 = vadd.f32 %v1555_v53, %v1549_v56 }
 0x19a   : > { %v1557_v61 = vadd.f32 %v1556_v44, %v1550_v21  ;;  %v1537_v28 = vadd.f32 %v1536_v46, %v1530_v32 }
 0x19c   : > { %v1538_v30 = vadd.f32 %v1537_v28, %v1531_v40  ;;  %v1558_v23 = vadd.f32 %v1557_v61, %v1551_v24 }
 0x19e   : > { %v1539_v33 = vadd.f32 %v1538_v30, %v1532_v41  ;;  %v1559_v34 = vadd.f32 %v1558_v23, %v1552_v55 }
 0x1a0   : > { %v1540_v42 = vadd.f32 %v1539_v33, %v1533_v18  ;;  %v1560_v45 = vadd.f32 %v1559_v34, %v1553_v36 }
 0x1a2   : > { %v1541_v49 = vrot.slane %v1540_v42, 4  ;;  %v1561_v52 = vadd.f32 %v1560_v45, %v1554_v38 }
 0x1a4   : > { %v1542_v57 = vadd.f32 %v1541_v49, %v1540_v42  ;;  %v1562_v59 = vrot.slane %v1561_v52, 4 }
 0x1a6   : > { %v1543_v0 = vrot.slane %v1542_v57, 2  ;;  %v1563_v37 = vadd.f32 %v1562_v59, %v1561_v52 }
 0x1a8   : > { %v1544_v4 = vadd.f32 %v1543_v0, %v1542_v57  ;;  %v1564_v39 = vrot.slane %v1563_v37, 2 }
 0x1aa   : > { %v1545_v51 = vrot.slane %v1544_v4, 1  ;;  %v1565_v54 = vadd.f32 %v1564_v39, %v1563_v37 }
 0x1ac   : > { %v1566_v58 = vrot.slane %v1565_v54, 1  ;;  %v1546_v63 = vadd.f32 %v1545_v51, %v1544_v4 }
 0x1ae   : > { %v1567_v5 = vadd.f32 %v1566_v58, %v1565_v54 }
 0x1b0   : > { %v1569_v60 = vsel %vm1568_vm0, %v1546_v63, %v1567_v5 }
 0x1b1   : > { %1570 = vst [vmem:[%s235_s11] sm:$0x3] %v1569_v60 }
 0x1b2 PF: > { %s16_s18 = sadd.s32 1, %s2468_s18  }
 0x1b3   : > { %p13_p4 = scmp.ge.s32.totalorder %s16_s18, 4  }
 0x1b5   :  { %15 = sbr.rel (!%p13_p4) target bundleno = 1 (0x1), region = 89 }

</bundles_post_ra>
